<compile_context>
chip_gen: v7x
topology: tpu7x:2x2x1
jax: 0.10.0
libtpu: 0.0.40
codegen_flags: <defaults>
</compile_context>

<pallas_src>
import jax
import jax.numpy as jnp
from jax.experimental import pallas as pl
from jax.experimental.pallas import tpu as pltpu


# ----------------------------------------------------------------------------
# Fused kernel: one grid step == `b_img` row-stacked images.
# ----------------------------------------------------------------------------
def _lenet5_kernel(x_ref, t1_ref, b1_ref, t2_ref, b2_ref,
                   p1a_ref, p1b_ref, p2a_ref, p2b_ref, se_ref, so_ref,
                   wf1_ref, bf1_ref, wf2_ref, bf2_ref, out_ref, a1_ref):
    f32 = jnp.float32
    b_img = out_ref.shape[1]          # images folded into this grid step
    h1 = p1a_ref.shape[1]             # = b_img*28 - 4 (row-stacked conv1 rows)
    h2 = p2a_ref.shape[1]             # = b_img*16 - 8 (row-stacked conv2 rows)
    assert x_ref.shape[1] == h1 + 4 and a1_ref.shape[0] == h2 + 8

    # ---- conv1 (1->6, 5x5 valid): 5 Toeplitz matmuls over the row-stacked
    #      image; kh shift absorbed into the ref-sliced vld. Rows that cross an
    #      image boundary are garbage and are simply never selected by pool1.
    acc1 = jnp.dot(x_ref[0, 0:h1, :], t1_ref[0], preferred_element_type=f32)
    for i in range(1, 5):
        acc1 = acc1 + jnp.dot(x_ref[0, i:i + h1, :], t1_ref[i],
                              preferred_element_type=f32)
    acc1 = acc1 + b1_ref[...]                                   # [h1, 144]

    # ---- pool1 (2x2 max) + ReLU: host-precomputed 0/1 selectors -------------
    hsel1 = jnp.maximum(
        jnp.dot(p1a_ref[...], acc1, preferred_element_type=f32),
        jnp.dot(p1b_ref[...], acc1, preferred_element_type=f32))
    act1 = jnp.maximum(
        jnp.maximum(jnp.dot(hsel1, se_ref[...], preferred_element_type=f32),
                    jnp.dot(hsel1, so_ref[...], preferred_element_type=f32)),
        0.0)                               # [b*16, 72], row bi*16+h, col ci*12+w
    a1_ref[...] = act1                     # park in VMEM so conv2 can ref-slice

    # ---- conv2 (6->16, 5x5 valid): channel loop folded into the contraction,
    #      5 matmuls with K=72 (was 30 matmuls with K=12). ---------------------
    acc2 = jnp.dot(a1_ref[0:h2, :], t2_ref[0], preferred_element_type=f32)
    for i in range(1, 5):
        acc2 = acc2 + jnp.dot(a1_ref[i:i + h2, :], t2_ref[i],
                              preferred_element_type=f32)
    acc2 = acc2 + b2_ref[...]                                   # [h2, 128]

    # ---- pool2 + ReLU; output rows laid out as h*8 + image so fc1 sees
    #      8-aligned sublane slices. ------------------------------------------
    hsel2 = jnp.maximum(
        jnp.dot(p2a_ref[...], acc2, preferred_element_type=f32),
        jnp.dot(p2b_ref[...], acc2, preferred_element_type=f32))
    se2 = se_ref[0:128, 0:64]
    so2 = so_ref[0:128, 0:64]
    act2 = jnp.maximum(
        jnp.maximum(jnp.dot(hsel2, se2, preferred_element_type=f32),
                    jnp.dot(hsel2, so2, preferred_element_type=f32)),
        0.0)                               # [32, 64], row h*8 + img, col co*4+w

    # ---- fc1 (+ReLU) and fc2; fc1 weights pre-split per pooled row h --------
    y = jnp.dot(act2[0:8, :], wf1_ref[0], preferred_element_type=f32)
    for h in range(1, 4):
        y = y + jnp.dot(act2[8 * h:8 * h + 8, :], wf1_ref[h],
                        preferred_element_type=f32)
    y = jnp.maximum(y + bf1_ref[...], 0.0)                      # [8, 120]
    logits = jnp.dot(y, wf2_ref[...], preferred_element_type=f32) + bf2_ref[...]
    out_ref[0, :, :] = logits[0:b_img, :].astype(out_ref.dtype)


# ----------------------------------------------------------------------------
# One-time host-side parameter / constant repacking (tiny, layout only).
# ----------------------------------------------------------------------------
def _toeplitz_weights(w, wo):
    """w: [Cout, Cin, KH, KW] -> T: [Cin*KH, Win, Cout*Wo], Win = Wo + KW - 1."""
    cout, cin, kh, kw = w.shape
    win = wo + kw - 1
    row = jnp.arange(cin * kh)[:, None, None]
    ci = row // kh
    ki = row % kh
    wcol = jnp.arange(win)[None, :, None]
    col = jnp.arange(cout * wo)[None, None, :]
    co = col // wo
    wpos = col % wo
    kj = wcol - wpos
    valid = (kj >= 0) & (kj < kw)
    vals = w[co, ci, ki, jnp.clip(kj, 0, kw - 1)]
    return jnp.where(valid, vals, 0.0).astype(jnp.float32)


def _pool1_selectors(b):
    # Output row bi*16 + h (h<12; rows 12..15 per image stay zero) picks the
    # row pair (bi*28 + 2h, bi*28 + 2h + 1) of the stacked conv1 output.
    rows_out, rows_in = b * 16, b * 28 - 4
    out_r = jnp.arange(rows_out)
    bi, h = out_r // 16, out_r % 16
    src = bi * 28 + 2 * h
    valid = h < 12
    col = jnp.arange(rows_in)[None, :]
    pa = ((col == src[:, None]) & valid[:, None]).astype(jnp.float32)
    pb = ((col == (src + 1)[:, None]) & valid[:, None]).astype(jnp.float32)
    return pa, pb


def _pool2_selectors(b):
    # Output row h*8 + bi (bi<b) picks the row pair (bi*16 + 2h, +1) of the
    # stacked conv2 output; h-major layout makes fc1's per-h slices 8-aligned.
    rows_out, rows_in = 32, b * 16 - 8
    out_r = jnp.arange(rows_out)
    h, bi = out_r // 8, out_r % 8
    src = bi * 16 + 2 * h
    valid = bi < b
    col = jnp.arange(rows_in)[None, :]
    pa = ((col == src[:, None]) & valid[:, None]).astype(jnp.float32)
    pb = ((col == (src + 1)[:, None]) & valid[:, None]).astype(jnp.float32)
    return pa, pb


def _lane_selectors(width=144):
    # Even / odd lane pick (2x2 pooling in W never crosses a channel boundary
    # because per-channel widths 24 and 8 are even -- fixed LeNet5 geometry).
    r = jnp.arange(width)[:, None]
    c = jnp.arange(width // 2)[None, :]
    se = (r == 2 * c).astype(jnp.float32)
    so = (r == 2 * c + 1).astype(jnp.float32)
    return se, so


def pack_params(params, images_per_step):
    b = images_per_step
    t1 = _toeplitz_weights(params["conv1_w"], 24)              # [5, 28, 144]
    t2 = _toeplitz_weights(params["conv2_w"], 8)               # [30, 12, 128]
    # Fold the input-channel loop into the contraction: [kh, ci*12+win, co*8+w]
    t2 = t2.reshape(6, 5, 12, 128).transpose(1, 0, 2, 3).reshape(5, 72, 128)
    b1e = jnp.repeat(params["conv1_b"].astype(jnp.float32), 24)[None, :]
    b2e = jnp.repeat(params["conv2_b"].astype(jnp.float32), 8)[None, :]
    p1a, p1b = _pool1_selectors(b)
    p2a, p2b = _pool2_selectors(b)
    se, so = _lane_selectors(144)
    # fc1 expects PyTorch NCHW flatten order c*16 + h*4 + w; pooled conv2 output
    # has columns co*4 + w, so split the weight per pooled row h.
    wf1 = (params["fc1_w"].reshape(120, 16, 4, 4)
           .transpose(2, 1, 3, 0).reshape(4, 64, 120).astype(jnp.float32))
    bf1 = params["fc1_b"].astype(jnp.float32)[None, :]
    wf2 = params["fc2_w"].astype(jnp.float32).T                 # [120, 10]
    bf2 = params["fc2_b"].astype(jnp.float32)[None, :]
    return (t1, b1e, t2, b2e, p1a, p1b, p2a, p2b, se, so, wf1, bf1, wf2, bf2)


def _images_per_step(n):
    """v7x has 2 TensorCores/chip: keep >=2 grid steps so the 'parallel' batch
    axis can split across cores.  Single-TC chips (v5e/v6e): fold the whole
    (tiny) batch into one fat grid step."""
    try:
        kind = jax.devices()[0].device_kind.lower()
    except Exception:
        kind = ""
    if "v7" in kind or "7x" in kind:
        b = max(1, n // 2)
    else:
        b = n
    b = max(1, min(b, 8))
    while n % b:
        b -= 1
    return b


# ----------------------------------------------------------------------------
# Forward: a single pallas_call over a batch-block grid.
# ----------------------------------------------------------------------------
def lenet5_forward(x_nchw, packed, images_per_step):
    n = x_nchw.shape[0]
    b = images_per_step
    assert x_nchw.shape[1:] == (1, 28, 28), x_nchw.shape
    assert 1 <= b <= 8 and n % b == 0, (n, b)
    steps = n // b
    # Row-stack `b` images per grid step into one tall [b*28, 28] block.
    xs = x_nchw.astype(jnp.float32).reshape(steps, b * 28, 28)
    (t1, b1e, t2, b2e, p1a, p1b, p2a, p2b, se, so, wf1, bf1, wf2, bf2) = packed

    out = pl.pallas_call(
        _lenet5_kernel,
        out_shape=jax.ShapeDtypeStruct((steps, b, 10), jnp.float32),
        grid=(steps,),
        in_specs=[
            pl.BlockSpec((1, b * 28, 28), lambda i: (i, 0, 0)),
            pl.BlockSpec((5, 28, 144), lambda i: (0, 0, 0)),
            pl.BlockSpec((1, 144), lambda i: (0, 0)),
            pl.BlockSpec((5, 72, 128), lambda i: (0, 0, 0)),
            pl.BlockSpec((1, 128), lambda i: (0, 0)),
            pl.BlockSpec(p1a.shape, lambda i: (0, 0)),
            pl.BlockSpec(p1b.shape, lambda i: (0, 0)),
            pl.BlockSpec(p2a.shape, lambda i: (0, 0)),
            pl.BlockSpec(p2b.shape, lambda i: (0, 0)),
            pl.BlockSpec((144, 72), lambda i: (0, 0)),
            pl.BlockSpec((144, 72), lambda i: (0, 0)),
            pl.BlockSpec((4, 64, 120), lambda i: (0, 0, 0)),
            pl.BlockSpec((1, 120), lambda i: (0, 0)),
            pl.BlockSpec((120, 10), lambda i: (0, 0)),
            pl.BlockSpec((1, 10), lambda i: (0, 0)),
        ],
        out_specs=pl.BlockSpec((1, b, 10), lambda i: (i, 0, 0)),
        scratch_shapes=[pltpu.VMEM((b * 16, 72), jnp.float32)],
        compiler_params=pltpu.CompilerParams(
            dimension_semantics=("parallel",)),
    )(xs, t1, b1e, t2, b2e, p1a, p1b, p2a, p2b, se, so, wf1, bf1, wf2, bf2)
    return out.reshape(n, 10)


# ----------------------------------------------------------------------------
# Pure-JAX reference (same semantics as the PyTorch module) for validation.
# ----------------------------------------------------------------------------
def _reference_forward(x, params):
    hi = jax.lax.Precision.HIGHEST

    def conv(inp, w, b):
        y = jax.lax.conv_general_dilated(
            inp, w, window_strides=(1, 1), padding="VALID",
            dimension_numbers=("NCHW", "OIHW", "NCHW"), precision=hi)
        return y + b[None, :, None, None]

    def pool_relu(y):
        n, c, h, w = y.shape
        y = y.reshape(n, c, h // 2, 2, w // 2, 2).max(axis=(3, 5))
        return jnp.maximum(y, 0.0)

    y = pool_relu(conv(x, params["conv1_w"], params["conv1_b"]))
    y = pool_relu(conv(y, params["conv2_w"], params["conv2_b"]))
    y = y.reshape(y.shape[0], -1)
    y = jnp.maximum(
        jnp.dot(y, params["fc1_w"].T, precision=hi) + params["fc1_b"], 0.0)
    return jnp.dot(y, params["fc2_w"].T, precision=hi) + params["fc2_b"]


def init_params(key):
    ks = jax.random.split(key, 8)
    s = 0.1
    return {
        # PyTorch conv weight layout: [Cout, Cin, KH, KW]
        "conv1_w": s * jax.random.normal(ks[0], (6, 1, 5, 5), jnp.float32),
        "conv1_b": s * jax.random.normal(ks[1], (6,), jnp.float32),
        "conv2_w": s * jax.random.normal(ks[2], (16, 6, 5, 5), jnp.float32),
        "conv2_b": s * jax.random.normal(ks[3], (16,), jnp.float32),
        # PyTorch linear weight layout: [out_features, in_features]
        "fc1_w": s * jax.random.normal(ks[4], (120, 256), jnp.float32),
        "fc1_b": s * jax.random.normal(ks[5], (120,), jnp.float32),
        "fc2_w": s * jax.random.normal(ks[6], (10, 120), jnp.float32),
        "fc2_b": s * jax.random.normal(ks[7], (10,), jnp.float32),
    }


if __name__ == "__main__":
    key = jax.random.PRNGKey(0)
    k_in, k_par = jax.random.split(key)
    # LeNet5 geometry requires 28x28 single-channel input (flatten -> 4*4*16).
    x = jax.random.normal(k_in, (2, 1, 28, 28), jnp.float32)
    params = init_params(k_par)

    b_img = _images_per_step(x.shape[0])        # 1 per step on v7x, else batch
    packed = pack_params(params, b_img)

    fwd = jax.jit(lenet5_forward, static_argnums=(2,))
    logits = fwd(x, packed, b_img)
    jax.block_until_ready(logits)
    assert logits.shape == (2, 10), logits.shape

    ref = jax.jit(_reference_forward)(x, params)
    jax.block_until_ready(ref)
    err = float(jnp.max(jnp.abs(logits - ref)))
    assert err < 2e-2, err

    print("KERNEL_OK")
</pallas_src>

<mosaic_0001>
module attributes {stable_mosaic.version = 11 : i64} {
  func.func @_lenet5_kernel(%arg0: i32, %arg1: memref<1x56x28xf32, #tpu.memory_space<vmem>>, %arg2: memref<5x28x144xf32, #tpu.memory_space<vmem>>, %arg3: memref<1x144xf32, #tpu.memory_space<vmem>>, %arg4: memref<5x72x128xf32, #tpu.memory_space<vmem>>, %arg5: memref<1x128xf32, #tpu.memory_space<vmem>>, %arg6: memref<32x52xf32, #tpu.memory_space<vmem>>, %arg7: memref<32x52xf32, #tpu.memory_space<vmem>>, %arg8: memref<32x24xf32, #tpu.memory_space<vmem>>, %arg9: memref<32x24xf32, #tpu.memory_space<vmem>>, %arg10: memref<144x72xf32, #tpu.memory_space<vmem>>, %arg11: memref<144x72xf32, #tpu.memory_space<vmem>>, %arg12: memref<4x64x120xf32, #tpu.memory_space<vmem>>, %arg13: memref<1x120xf32, #tpu.memory_space<vmem>>, %arg14: memref<120x10xf32, #tpu.memory_space<vmem>>, %arg15: memref<1x10xf32, #tpu.memory_space<vmem>>, %arg16: memref<1x2x10xf32, #tpu.memory_space<vmem>>, %arg17: memref<32x72xf32, #tpu.memory_space<vmem>>) attributes {dimension_semantics = [#tpu.dimension_semantics<parallel>], iteration_bounds = array<i64: 1>, scalar_prefetch = 0 : i64, scratch_operands = 1 : i64, tpu.core_type = #tpu.core_type<tc>, window_params = [{transform_indices = @transform_0, window_bounds = array<i64: 1, 56, 28>}, {pipeline_mode = #tpu.pipeline_mode<synchronous>, transform_indices = @transform_1, window_bounds = array<i64: 5, 28, 144>}, {pipeline_mode = #tpu.pipeline_mode<synchronous>, transform_indices = @transform_2, window_bounds = array<i64: 1, 144>}, {pipeline_mode = #tpu.pipeline_mode<synchronous>, transform_indices = @transform_3, window_bounds = array<i64: 5, 72, 128>}, {pipeline_mode = #tpu.pipeline_mode<synchronous>, transform_indices = @transform_4, window_bounds = array<i64: 1, 128>}, {pipeline_mode = #tpu.pipeline_mode<synchronous>, transform_indices = @transform_5, window_bounds = array<i64: 32, 52>}, {pipeline_mode = #tpu.pipeline_mode<synchronous>, transform_indices = @transform_6, window_bounds = array<i64: 32, 52>}, {pipeline_mode = #tpu.pipeline_mode<synchronous>, transform_indices = @transform_7, window_bounds = array<i64: 32, 24>}, {pipeline_mode = #tpu.pipeline_mode<synchronous>, transform_indices = @transform_8, window_bounds = array<i64: 32, 24>}, {pipeline_mode = #tpu.pipeline_mode<synchronous>, transform_indices = @transform_9, window_bounds = array<i64: 144, 72>}, {pipeline_mode = #tpu.pipeline_mode<synchronous>, transform_indices = @transform_10, window_bounds = array<i64: 144, 72>}, {pipeline_mode = #tpu.pipeline_mode<synchronous>, transform_indices = @transform_11, window_bounds = array<i64: 4, 64, 120>}, {pipeline_mode = #tpu.pipeline_mode<synchronous>, transform_indices = @transform_12, window_bounds = array<i64: 1, 120>}, {pipeline_mode = #tpu.pipeline_mode<synchronous>, transform_indices = @transform_13, window_bounds = array<i64: 120, 10>}, {pipeline_mode = #tpu.pipeline_mode<synchronous>, transform_indices = @transform_14, window_bounds = array<i64: 1, 10>}, {transform_indices = @transform_15, window_bounds = array<i64: 1, 2, 10>}]} {
    %c0 = arith.constant 0 : index
    %c0_0 = arith.constant 0 : index
    %c0_1 = arith.constant 0 : index
    %0 = vector.load %arg1[%c0, %c0_0, %c0_1] : memref<1x56x28xf32, #tpu.memory_space<vmem>>, vector<1x52x28xf32>
    %1 = vector.shape_cast %0 : vector<1x52x28xf32> to vector<52x28xf32>
    %c0_2 = arith.constant 0 : index
    %c0_3 = arith.constant 0 : index
    %c0_4 = arith.constant 0 : index
    %2 = vector.load %arg2[%c0_2, %c0_3, %c0_4] : memref<5x28x144xf32, #tpu.memory_space<vmem>>, vector<1x28x144xf32>
    %3 = vector.shape_cast %2 : vector<1x28x144xf32> to vector<28x144xf32>
    %cst = arith.constant dense<0.000000e+00> : vector<52x144xf32>
    %4 = tpu.matmul %1, %3, %cst {dimension_numbers = #tpu.dot_dimension_numbers<[1], [0], [0], [1], [0, 0, 1, 1], [], []>} : vector<52x28xf32>, vector<28x144xf32>, vector<52x144xf32> -> vector<52x144xf32>
    %c0_5 = arith.constant 0 : index
    %c1 = arith.constant 1 : index
    %c0_6 = arith.constant 0 : index
    %5 = vector.load %arg1[%c0_5, %c1, %c0_6] : memref<1x56x28xf32, #tpu.memory_space<vmem>>, vector<1x52x28xf32>
    %6 = vector.shape_cast %5 : vector<1x52x28xf32> to vector<52x28xf32>
    %c1_7 = arith.constant 1 : index
    %c0_8 = arith.constant 0 : index
    %c0_9 = arith.constant 0 : index
    %7 = vector.load %arg2[%c1_7, %c0_8, %c0_9] : memref<5x28x144xf32, #tpu.memory_space<vmem>>, vector<1x28x144xf32>
    %8 = vector.shape_cast %7 : vector<1x28x144xf32> to vector<28x144xf32>
    %cst_10 = arith.constant dense<0.000000e+00> : vector<52x144xf32>
    %9 = tpu.matmul %6, %8, %cst_10 {dimension_numbers = #tpu.dot_dimension_numbers<[1], [0], [0], [1], [0, 0, 1, 1], [], []>} : vector<52x28xf32>, vector<28x144xf32>, vector<52x144xf32> -> vector<52x144xf32>
    %10 = arith.addf %4, %9 : vector<52x144xf32>
    %c0_11 = arith.constant 0 : index
    %c2 = arith.constant 2 : index
    %c0_12 = arith.constant 0 : index
    %11 = vector.load %arg1[%c0_11, %c2, %c0_12] : memref<1x56x28xf32, #tpu.memory_space<vmem>>, vector<1x52x28xf32>
    %12 = vector.shape_cast %11 : vector<1x52x28xf32> to vector<52x28xf32>
    %c2_13 = arith.constant 2 : index
    %c0_14 = arith.constant 0 : index
    %c0_15 = arith.constant 0 : index
    %13 = vector.load %arg2[%c2_13, %c0_14, %c0_15] : memref<5x28x144xf32, #tpu.memory_space<vmem>>, vector<1x28x144xf32>
    %14 = vector.shape_cast %13 : vector<1x28x144xf32> to vector<28x144xf32>
    %cst_16 = arith.constant dense<0.000000e+00> : vector<52x144xf32>
    %15 = tpu.matmul %12, %14, %cst_16 {dimension_numbers = #tpu.dot_dimension_numbers<[1], [0], [0], [1], [0, 0, 1, 1], [], []>} : vector<52x28xf32>, vector<28x144xf32>, vector<52x144xf32> -> vector<52x144xf32>
    %16 = arith.addf %10, %15 : vector<52x144xf32>
    %c0_17 = arith.constant 0 : index
    %c3 = arith.constant 3 : index
    %c0_18 = arith.constant 0 : index
    %17 = vector.load %arg1[%c0_17, %c3, %c0_18] : memref<1x56x28xf32, #tpu.memory_space<vmem>>, vector<1x52x28xf32>
    %18 = vector.shape_cast %17 : vector<1x52x28xf32> to vector<52x28xf32>
    %c3_19 = arith.constant 3 : index
    %c0_20 = arith.constant 0 : index
    %c0_21 = arith.constant 0 : index
    %19 = vector.load %arg2[%c3_19, %c0_20, %c0_21] : memref<5x28x144xf32, #tpu.memory_space<vmem>>, vector<1x28x144xf32>
    %20 = vector.shape_cast %19 : vector<1x28x144xf32> to vector<28x144xf32>
    %cst_22 = arith.constant dense<0.000000e+00> : vector<52x144xf32>
    %21 = tpu.matmul %18, %20, %cst_22 {dimension_numbers = #tpu.dot_dimension_numbers<[1], [0], [0], [1], [0, 0, 1, 1], [], []>} : vector<52x28xf32>, vector<28x144xf32>, vector<52x144xf32> -> vector<52x144xf32>
    %22 = arith.addf %16, %21 : vector<52x144xf32>
    %c0_23 = arith.constant 0 : index
    %c4 = arith.constant 4 : index
    %c0_24 = arith.constant 0 : index
    %23 = vector.load %arg1[%c0_23, %c4, %c0_24] : memref<1x56x28xf32, #tpu.memory_space<vmem>>, vector<1x52x28xf32>
    %24 = vector.shape_cast %23 : vector<1x52x28xf32> to vector<52x28xf32>
    %c4_25 = arith.constant 4 : index
    %c0_26 = arith.constant 0 : index
    %c0_27 = arith.constant 0 : index
    %25 = vector.load %arg2[%c4_25, %c0_26, %c0_27] : memref<5x28x144xf32, #tpu.memory_space<vmem>>, vector<1x28x144xf32>
    %26 = vector.shape_cast %25 : vector<1x28x144xf32> to vector<28x144xf32>
    %cst_28 = arith.constant dense<0.000000e+00> : vector<52x144xf32>
    %27 = tpu.matmul %24, %26, %cst_28 {dimension_numbers = #tpu.dot_dimension_numbers<[1], [0], [0], [1], [0, 0, 1, 1], [], []>} : vector<52x28xf32>, vector<28x144xf32>, vector<52x144xf32> -> vector<52x144xf32>
    %28 = arith.addf %22, %27 : vector<52x144xf32>
    %c0_29 = arith.constant 0 : index
    %c0_30 = arith.constant 0 : index
    %29 = vector.load %arg3[%c0_29, %c0_30] : memref<1x144xf32, #tpu.memory_space<vmem>>, vector<1x144xf32>
    %30 = vector.broadcast %29 : vector<1x144xf32> to vector<52x144xf32>
    %31 = arith.addf %28, %30 : vector<52x144xf32>
    %c0_31 = arith.constant 0 : index
    %c0_32 = arith.constant 0 : index
    %32 = vector.load %arg6[%c0_31, %c0_32] : memref<32x52xf32, #tpu.memory_space<vmem>>, vector<32x52xf32>
    %cst_33 = arith.constant dense<0.000000e+00> : vector<32x144xf32>
    %33 = tpu.matmul %32, %31, %cst_33 {dimension_numbers = #tpu.dot_dimension_numbers<[1], [0], [0], [1], [0, 0, 1, 1], [], []>} : vector<32x52xf32>, vector<52x144xf32>, vector<32x144xf32> -> vector<32x144xf32>
    %c0_34 = arith.constant 0 : index
    %c0_35 = arith.constant 0 : index
    %34 = vector.load %arg7[%c0_34, %c0_35] : memref<32x52xf32, #tpu.memory_space<vmem>>, vector<32x52xf32>
    %cst_36 = arith.constant dense<0.000000e+00> : vector<32x144xf32>
    %35 = tpu.matmul %34, %31, %cst_36 {dimension_numbers = #tpu.dot_dimension_numbers<[1], [0], [0], [1], [0, 0, 1, 1], [], []>} : vector<32x52xf32>, vector<52x144xf32>, vector<32x144xf32> -> vector<32x144xf32>
    %36 = arith.maximumf %33, %35 : vector<32x144xf32>
    %c0_37 = arith.constant 0 : index
    %c0_38 = arith.constant 0 : index
    %37 = vector.load %arg10[%c0_37, %c0_38] : memref<144x72xf32, #tpu.memory_space<vmem>>, vector<144x72xf32>
    %cst_39 = arith.constant dense<0.000000e+00> : vector<32x72xf32>
    %38 = tpu.matmul %36, %37, %cst_39 {dimension_numbers = #tpu.dot_dimension_numbers<[1], [0], [0], [1], [0, 0, 1, 1], [], []>} : vector<32x144xf32>, vector<144x72xf32>, vector<32x72xf32> -> vector<32x72xf32>
    %c0_40 = arith.constant 0 : index
    %c0_41 = arith.constant 0 : index
    %39 = vector.load %arg11[%c0_40, %c0_41] : memref<144x72xf32, #tpu.memory_space<vmem>>, vector<144x72xf32>
    %cst_42 = arith.constant dense<0.000000e+00> : vector<32x72xf32>
    %40 = tpu.matmul %36, %39, %cst_42 {dimension_numbers = #tpu.dot_dimension_numbers<[1], [0], [0], [1], [0, 0, 1, 1], [], []>} : vector<32x144xf32>, vector<144x72xf32>, vector<32x72xf32> -> vector<32x72xf32>
    %41 = arith.maximumf %38, %40 : vector<32x72xf32>
    %cst_43 = arith.constant 0.000000e+00 : f32
    %42 = vector.broadcast %cst_43 : f32 to vector<32x72xf32>
    %43 = arith.maximumf %41, %42 : vector<32x72xf32>
    %c0_44 = arith.constant 0 : index
    %c0_45 = arith.constant 0 : index
    %44 = vector.load %arg17[%c0_44, %c0_45] : memref<32x72xf32, #tpu.memory_space<vmem>>, vector<32x72xf32>
    tpu.vector_store %arg17[%c0_44, %c0_45], %43 {strides = array<i32>} : memref<32x72xf32, #tpu.memory_space<vmem>>, vector<32x72xf32>,
    %c0_46 = arith.constant 0 : index
    %c0_47 = arith.constant 0 : index
    %45 = vector.load %arg17[%c0_46, %c0_47] : memref<32x72xf32, #tpu.memory_space<vmem>>, vector<24x72xf32>
    %c0_48 = arith.constant 0 : index
    %c0_49 = arith.constant 0 : index
    %c0_50 = arith.constant 0 : index
    %46 = vector.load %arg4[%c0_48, %c0_49, %c0_50] : memref<5x72x128xf32, #tpu.memory_space<vmem>>, vector<1x72x128xf32>
    %47 = vector.shape_cast %46 : vector<1x72x128xf32> to vector<72x128xf32>
    %cst_51 = arith.constant dense<0.000000e+00> : vector<24x128xf32>
    %48 = tpu.matmul %45, %47, %cst_51 {dimension_numbers = #tpu.dot_dimension_numbers<[1], [0], [0], [1], [0, 0, 1, 1], [], []>} : vector<24x72xf32>, vector<72x128xf32>, vector<24x128xf32> -> vector<24x128xf32>
    %c1_52 = arith.constant 1 : index
    %c0_53 = arith.constant 0 : index
    %49 = vector.load %arg17[%c1_52, %c0_53] : memref<32x72xf32, #tpu.memory_space<vmem>>, vector<24x72xf32>
    %c1_54 = arith.constant 1 : index
    %c0_55 = arith.constant 0 : index
    %c0_56 = arith.constant 0 : index
    %50 = vector.load %arg4[%c1_54, %c0_55, %c0_56] : memref<5x72x128xf32, #tpu.memory_space<vmem>>, vector<1x72x128xf32>
    %51 = vector.shape_cast %50 : vector<1x72x128xf32> to vector<72x128xf32>
    %cst_57 = arith.constant dense<0.000000e+00> : vector<24x128xf32>
    %52 = tpu.matmul %49, %51, %cst_57 {dimension_numbers = #tpu.dot_dimension_numbers<[1], [0], [0], [1], [0, 0, 1, 1], [], []>} : vector<24x72xf32>, vector<72x128xf32>, vector<24x128xf32> -> vector<24x128xf32>
    %53 = arith.addf %48, %52 : vector<24x128xf32>
    %c2_58 = arith.constant 2 : index
    %c0_59 = arith.constant 0 : index
    %54 = vector.load %arg17[%c2_58, %c0_59] : memref<32x72xf32, #tpu.memory_space<vmem>>, vector<24x72xf32>
    %c2_60 = arith.constant 2 : index
    %c0_61 = arith.constant 0 : index
    %c0_62 = arith.constant 0 : index
    %55 = vector.load %arg4[%c2_60, %c0_61, %c0_62] : memref<5x72x128xf32, #tpu.memory_space<vmem>>, vector<1x72x128xf32>
    %56 = vector.shape_cast %55 : vector<1x72x128xf32> to vector<72x128xf32>
    %cst_63 = arith.constant dense<0.000000e+00> : vector<24x128xf32>
    %57 = tpu.matmul %54, %56, %cst_63 {dimension_numbers = #tpu.dot_dimension_numbers<[1], [0], [0], [1], [0, 0, 1, 1], [], []>} : vector<24x72xf32>, vector<72x128xf32>, vector<24x128xf32> -> vector<24x128xf32>
    %58 = arith.addf %53, %57 : vector<24x128xf32>
    %c3_64 = arith.constant 3 : index
    %c0_65 = arith.constant 0 : index
    %59 = vector.load %arg17[%c3_64, %c0_65] : memref<32x72xf32, #tpu.memory_space<vmem>>, vector<24x72xf32>
    %c3_66 = arith.constant 3 : index
    %c0_67 = arith.constant 0 : index
    %c0_68 = arith.constant 0 : index
    %60 = vector.load %arg4[%c3_66, %c0_67, %c0_68] : memref<5x72x128xf32, #tpu.memory_space<vmem>>, vector<1x72x128xf32>
    %61 = vector.shape_cast %60 : vector<1x72x128xf32> to vector<72x128xf32>
    %cst_69 = arith.constant dense<0.000000e+00> : vector<24x128xf32>
    %62 = tpu.matmul %59, %61, %cst_69 {dimension_numbers = #tpu.dot_dimension_numbers<[1], [0], [0], [1], [0, 0, 1, 1], [], []>} : vector<24x72xf32>, vector<72x128xf32>, vector<24x128xf32> -> vector<24x128xf32>
    %63 = arith.addf %58, %62 : vector<24x128xf32>
    %c4_70 = arith.constant 4 : index
    %c0_71 = arith.constant 0 : index
    %64 = vector.load %arg17[%c4_70, %c0_71] : memref<32x72xf32, #tpu.memory_space<vmem>>, vector<24x72xf32>
    %c4_72 = arith.constant 4 : index
    %c0_73 = arith.constant 0 : index
    %c0_74 = arith.constant 0 : index
    %65 = vector.load %arg4[%c4_72, %c0_73, %c0_74] : memref<5x72x128xf32, #tpu.memory_space<vmem>>, vector<1x72x128xf32>
    %66 = vector.shape_cast %65 : vector<1x72x128xf32> to vector<72x128xf32>
    %cst_75 = arith.constant dense<0.000000e+00> : vector<24x128xf32>
    %67 = tpu.matmul %64, %66, %cst_75 {dimension_numbers = #tpu.dot_dimension_numbers<[1], [0], [0], [1], [0, 0, 1, 1], [], []>} : vector<24x72xf32>, vector<72x128xf32>, vector<24x128xf32> -> vector<24x128xf32>
    %68 = arith.addf %63, %67 : vector<24x128xf32>
    %c0_76 = arith.constant 0 : index
    %c0_77 = arith.constant 0 : index
    %69 = vector.load %arg5[%c0_76, %c0_77] : memref<1x128xf32, #tpu.memory_space<vmem>>, vector<1x128xf32>
    %70 = vector.broadcast %69 : vector<1x128xf32> to vector<24x128xf32>
    %71 = arith.addf %68, %70 : vector<24x128xf32>
    %c0_78 = arith.constant 0 : index
    %c0_79 = arith.constant 0 : index
    %72 = vector.load %arg8[%c0_78, %c0_79] : memref<32x24xf32, #tpu.memory_space<vmem>>, vector<32x24xf32>
    %cst_80 = arith.constant dense<0.000000e+00> : vector<32x128xf32>
    %73 = tpu.matmul %72, %71, %cst_80 {dimension_numbers = #tpu.dot_dimension_numbers<[1], [0], [0], [1], [0, 0, 1, 1], [], []>} : vector<32x24xf32>, vector<24x128xf32>, vector<32x128xf32> -> vector<32x128xf32>
    %c0_81 = arith.constant 0 : index
    %c0_82 = arith.constant 0 : index
    %74 = vector.load %arg9[%c0_81, %c0_82] : memref<32x24xf32, #tpu.memory_space<vmem>>, vector<32x24xf32>
    %cst_83 = arith.constant dense<0.000000e+00> : vector<32x128xf32>
    %75 = tpu.matmul %74, %71, %cst_83 {dimension_numbers = #tpu.dot_dimension_numbers<[1], [0], [0], [1], [0, 0, 1, 1], [], []>} : vector<32x24xf32>, vector<24x128xf32>, vector<32x128xf32> -> vector<32x128xf32>
    %76 = arith.maximumf %73, %75 : vector<32x128xf32>
    %c0_84 = arith.constant 0 : index
    %c0_85 = arith.constant 0 : index
    %77 = vector.load %arg10[%c0_84, %c0_85] : memref<144x72xf32, #tpu.memory_space<vmem>>, vector<128x64xf32>
    %c0_86 = arith.constant 0 : index
    %c0_87 = arith.constant 0 : index
    %78 = vector.load %arg11[%c0_86, %c0_87] : memref<144x72xf32, #tpu.memory_space<vmem>>, vector<128x64xf32>
    %cst_88 = arith.constant dense<0.000000e+00> : vector<32x64xf32>
    %79 = tpu.matmul %76, %77, %cst_88 {dimension_numbers = #tpu.dot_dimension_numbers<[1], [0], [0], [1], [0, 0, 1, 1], [], []>} : vector<32x128xf32>, vector<128x64xf32>, vector<32x64xf32> -> vector<32x64xf32>
    %cst_89 = arith.constant dense<0.000000e+00> : vector<32x64xf32>
    %80 = tpu.matmul %76, %78, %cst_89 {dimension_numbers = #tpu.dot_dimension_numbers<[1], [0], [0], [1], [0, 0, 1, 1], [], []>} : vector<32x128xf32>, vector<128x64xf32>, vector<32x64xf32> -> vector<32x64xf32>
    %81 = arith.maximumf %79, %80 : vector<32x64xf32>
    %cst_90 = arith.constant 0.000000e+00 : f32
    %82 = vector.broadcast %cst_90 : f32 to vector<32x64xf32>
    %83 = arith.maximumf %81, %82 : vector<32x64xf32>
    %84 = vector.extract_strided_slice %83 {offsets = [0, 0], sizes = [8, 64], strides = [1, 1]} : vector<32x64xf32> to vector<8x64xf32>
    %c0_91 = arith.constant 0 : index
    %c0_92 = arith.constant 0 : index
    %c0_93 = arith.constant 0 : index
    %85 = vector.load %arg12[%c0_91, %c0_92, %c0_93] : memref<4x64x120xf32, #tpu.memory_space<vmem>>, vector<1x64x120xf32>
    %86 = vector.shape_cast %85 : vector<1x64x120xf32> to vector<64x120xf32>
    %cst_94 = arith.constant dense<0.000000e+00> : vector<8x120xf32>
    %87 = tpu.matmul %84, %86, %cst_94 {dimension_numbers = #tpu.dot_dimension_numbers<[1], [0], [0], [1], [0, 0, 1, 1], [], []>} : vector<8x64xf32>, vector<64x120xf32>, vector<8x120xf32> -> vector<8x120xf32>
    %88 = vector.extract_strided_slice %83 {offsets = [8, 0], sizes = [8, 64], strides = [1, 1]} : vector<32x64xf32> to vector<8x64xf32>
    %c1_95 = arith.constant 1 : index
    %c0_96 = arith.constant 0 : index
    %c0_97 = arith.constant 0 : index
    %89 = vector.load %arg12[%c1_95, %c0_96, %c0_97] : memref<4x64x120xf32, #tpu.memory_space<vmem>>, vector<1x64x120xf32>
    %90 = vector.shape_cast %89 : vector<1x64x120xf32> to vector<64x120xf32>
    %cst_98 = arith.constant dense<0.000000e+00> : vector<8x120xf32>
    %91 = tpu.matmul %88, %90, %cst_98 {dimension_numbers = #tpu.dot_dimension_numbers<[1], [0], [0], [1], [0, 0, 1, 1], [], []>} : vector<8x64xf32>, vector<64x120xf32>, vector<8x120xf32> -> vector<8x120xf32>
    %92 = arith.addf %87, %91 : vector<8x120xf32>
    %93 = vector.extract_strided_slice %83 {offsets = [16, 0], sizes = [8, 64], strides = [1, 1]} : vector<32x64xf32> to vector<8x64xf32>
    %c2_99 = arith.constant 2 : index
    %c0_100 = arith.constant 0 : index
    %c0_101 = arith.constant 0 : index
    %94 = vector.load %arg12[%c2_99, %c0_100, %c0_101] : memref<4x64x120xf32, #tpu.memory_space<vmem>>, vector<1x64x120xf32>
    %95 = vector.shape_cast %94 : vector<1x64x120xf32> to vector<64x120xf32>
    %cst_102 = arith.constant dense<0.000000e+00> : vector<8x120xf32>
    %96 = tpu.matmul %93, %95, %cst_102 {dimension_numbers = #tpu.dot_dimension_numbers<[1], [0], [0], [1], [0, 0, 1, 1], [], []>} : vector<8x64xf32>, vector<64x120xf32>, vector<8x120xf32> -> vector<8x120xf32>
    %97 = arith.addf %92, %96 : vector<8x120xf32>
    %98 = vector.extract_strided_slice %83 {offsets = [24, 0], sizes = [8, 64], strides = [1, 1]} : vector<32x64xf32> to vector<8x64xf32>
    %c3_103 = arith.constant 3 : index
    %c0_104 = arith.constant 0 : index
    %c0_105 = arith.constant 0 : index
    %99 = vector.load %arg12[%c3_103, %c0_104, %c0_105] : memref<4x64x120xf32, #tpu.memory_space<vmem>>, vector<1x64x120xf32>
    %100 = vector.shape_cast %99 : vector<1x64x120xf32> to vector<64x120xf32>
    %cst_106 = arith.constant dense<0.000000e+00> : vector<8x120xf32>
    %101 = tpu.matmul %98, %100, %cst_106 {dimension_numbers = #tpu.dot_dimension_numbers<[1], [0], [0], [1], [0, 0, 1, 1], [], []>} : vector<8x64xf32>, vector<64x120xf32>, vector<8x120xf32> -> vector<8x120xf32>
    %102 = arith.addf %97, %101 : vector<8x120xf32>
    %c0_107 = arith.constant 0 : index
    %c0_108 = arith.constant 0 : index
    %103 = vector.load %arg13[%c0_107, %c0_108] : memref<1x120xf32, #tpu.memory_space<vmem>>, vector<1x120xf32>
    %104 = vector.broadcast %103 : vector<1x120xf32> to vector<8x120xf32>
    %105 = arith.addf %102, %104 : vector<8x120xf32>
    %cst_109 = arith.constant 0.000000e+00 : f32
    %106 = vector.broadcast %cst_109 : f32 to vector<8x120xf32>
    %107 = arith.maximumf %105, %106 : vector<8x120xf32>
    %c0_110 = arith.constant 0 : index
    %c0_111 = arith.constant 0 : index
    %108 = vector.load %arg14[%c0_110, %c0_111] : memref<120x10xf32, #tpu.memory_space<vmem>>, vector<120x10xf32>
    %cst_112 = arith.constant dense<0.000000e+00> : vector<8x10xf32>
    %109 = tpu.matmul %107, %108, %cst_112 {dimension_numbers = #tpu.dot_dimension_numbers<[1], [0], [0], [1], [0, 0, 1, 1], [], []>} : vector<8x120xf32>, vector<120x10xf32>, vector<8x10xf32> -> vector<8x10xf32>
    %c0_113 = arith.constant 0 : index
    %c0_114 = arith.constant 0 : index
    %110 = vector.load %arg15[%c0_113, %c0_114] : memref<1x10xf32, #tpu.memory_space<vmem>>, vector<1x10xf32>
    %111 = vector.broadcast %110 : vector<1x10xf32> to vector<8x10xf32>
    %112 = arith.addf %109, %111 : vector<8x10xf32>
    %113 = vector.extract_strided_slice %112 {offsets = [0, 0], sizes = [2, 10], strides = [1, 1]} : vector<8x10xf32> to vector<2x10xf32>
    %c0_115 = arith.constant 0 : index
    %c0_116 = arith.constant 0 : index
    %c0_117 = arith.constant 0 : index
    %114 = vector.load %arg16[%c0_115, %c0_116, %c0_117] : memref<1x2x10xf32, #tpu.memory_space<vmem>>, vector<1x2x10xf32>
    %115 = vector.shape_cast %114 : vector<1x2x10xf32> to vector<2x10xf32>
    %116 = vector.shape_cast %113 : vector<2x10xf32> to vector<1x2x10xf32>
    tpu.vector_store %arg16[%c0_115, %c0_116, %c0_117], %116 {strides = array<i32>} : memref<1x2x10xf32, #tpu.memory_space<vmem>>, vector<1x2x10xf32>,
    return
  }
  func.func @transform_0(%arg0: i32) -> (i32, i32, i32) {
    %c0_i32 = arith.constant 0 : i32
    %c0_i32_0 = arith.constant 0 : i32
    %c0_i32_1 = arith.constant 0 : i32
    return %arg0, %c0_i32, %c0_i32_0 : i32, i32, i32
  }
  func.func @transform_1(%arg0: i32) -> (i32, i32, i32) {
    %c0_i32 = arith.constant 0 : i32
    %c0_i32_0 = arith.constant 0 : i32
    %c0_i32_1 = arith.constant 0 : i32
    %c0_i32_2 = arith.constant 0 : i32
    return %c0_i32, %c0_i32_0, %c0_i32_1 : i32, i32, i32
  }
  func.func @transform_2(%arg0: i32) -> (i32, i32) {
    %c0_i32 = arith.constant 0 : i32
    %c0_i32_0 = arith.constant 0 : i32
    %c0_i32_1 = arith.constant 0 : i32
    return %c0_i32, %c0_i32_0 : i32, i32
  }
  func.func @transform_3(%arg0: i32) -> (i32, i32, i32) {
    %c0_i32 = arith.constant 0 : i32
    %c0_i32_0 = arith.constant 0 : i32
    %c0_i32_1 = arith.constant 0 : i32
    %c0_i32_2 = arith.constant 0 : i32
    return %c0_i32, %c0_i32_0, %c0_i32_1 : i32, i32, i32
  }
  func.func @transform_4(%arg0: i32) -> (i32, i32) {
    %c0_i32 = arith.constant 0 : i32
    %c0_i32_0 = arith.constant 0 : i32
    %c0_i32_1 = arith.constant 0 : i32
    return %c0_i32, %c0_i32_0 : i32, i32
  }
  func.func @transform_5(%arg0: i32) -> (i32, i32) {
    %c0_i32 = arith.constant 0 : i32
    %c0_i32_0 = arith.constant 0 : i32
    %c0_i32_1 = arith.constant 0 : i32
    return %c0_i32, %c0_i32_0 : i32, i32
  }
  func.func @transform_6(%arg0: i32) -> (i32, i32) {
    %c0_i32 = arith.constant 0 : i32
    %c0_i32_0 = arith.constant 0 : i32
    %c0_i32_1 = arith.constant 0 : i32
    return %c0_i32, %c0_i32_0 : i32, i32
  }
  func.func @transform_7(%arg0: i32) -> (i32, i32) {
    %c0_i32 = arith.constant 0 : i32
    %c0_i32_0 = arith.constant 0 : i32
    %c0_i32_1 = arith.constant 0 : i32
    return %c0_i32, %c0_i32_0 : i32, i32
  }
  func.func @transform_8(%arg0: i32) -> (i32, i32) {
    %c0_i32 = arith.constant 0 : i32
    %c0_i32_0 = arith.constant 0 : i32
    %c0_i32_1 = arith.constant 0 : i32
    return %c0_i32, %c0_i32_0 : i32, i32
  }
  func.func @transform_9(%arg0: i32) -> (i32, i32) {
    %c0_i32 = arith.constant 0 : i32
    %c0_i32_0 = arith.constant 0 : i32
    %c0_i32_1 = arith.constant 0 : i32
    return %c0_i32, %c0_i32_0 : i32, i32
  }
  func.func @transform_10(%arg0: i32) -> (i32, i32) {
    %c0_i32 = arith.constant 0 : i32
    %c0_i32_0 = arith.constant 0 : i32
    %c0_i32_1 = arith.constant 0 : i32
    return %c0_i32, %c0_i32_0 : i32, i32
  }
  func.func @transform_11(%arg0: i32) -> (i32, i32, i32) {
    %c0_i32 = arith.constant 0 : i32
    %c0_i32_0 = arith.constant 0 : i32
    %c0_i32_1 = arith.constant 0 : i32
    %c0_i32_2 = arith.constant 0 : i32
    return %c0_i32, %c0_i32_0, %c0_i32_1 : i32, i32, i32
  }
  func.func @transform_12(%arg0: i32) -> (i32, i32) {
    %c0_i32 = arith.constant 0 : i32
    %c0_i32_0 = arith.constant 0 : i32
    %c0_i32_1 = arith.constant 0 : i32
    return %c0_i32, %c0_i32_0 : i32, i32
  }
  func.func @transform_13(%arg0: i32) -> (i32, i32) {
    %c0_i32 = arith.constant 0 : i32
    %c0_i32_0 = arith.constant 0 : i32
    %c0_i32_1 = arith.constant 0 : i32
    return %c0_i32, %c0_i32_0 : i32, i32
  }
  func.func @transform_14(%arg0: i32) -> (i32, i32) {
    %c0_i32 = arith.constant 0 : i32
    %c0_i32_0 = arith.constant 0 : i32
    %c0_i32_1 = arith.constant 0 : i32
    return %c0_i32, %c0_i32_0 : i32, i32
  }
  func.func @transform_15(%arg0: i32) -> (i32, i32, i32) {
    %c0_i32 = arith.constant 0 : i32
    %c0_i32_0 = arith.constant 0 : i32
    %c0_i32_1 = arith.constant 0 : i32
    return %arg0, %c0_i32, %c0_i32_0 : i32, i32, i32
  }
}

</mosaic_0001>

<bundles_post_ra>
// kernel: lenet5_forward.1
= control target key start
LH: loop header
LB: loop body
LE: loop exit
PB: predicated region body
PF: predicated region fallthrough
CT: control target
= control target key end

     0   :  { %s4755_s0 = inlined_call_operand.hbm [shape: f32[1,56,28], index: 0, kind: input, shape index: {}]   ;;  %s4756_s1 = inlined_call_operand.hbm [shape: f32[5,28,144], index: 1, kind: input, shape index: {}]   ;;  %s4757_s2 = inlined_call_operand.vmem [shape: f32[1,144], index: 2, kind: input, shape index: {}]   ;;  %s4758_s3 = inlined_call_operand.hbm [shape: f32[5,72,128], index: 3, kind: input, shape index: {}]   ;;  %s4759_s4 = inlined_call_operand.vmem [shape: f32[1,128], index: 4, kind: input, shape index: {}]   ;;  %s4760_s5 = inlined_call_operand.vmem [shape: f32[32,52], index: 5, kind: input, shape index: {}]   ;;  %s4761_s6 = inlined_call_operand.hbm [shape: f32[32,52], index: 6, kind: input, shape index: {}]   ;;  %s4762_s7 = inlined_call_operand.vmem [shape: f32[32,24], index: 7, kind: input, shape index: {}]   ;;  %s4763_s8 = inlined_call_operand.vmem [shape: f32[32,24], index: 8, kind: input, shape index: {}]   ;;  %s4764_s9 = inlined_call_operand.hbm [shape: f32[144,72], index: 9, kind: input, shape index: {}]   ;;  %s4765_s10 = inlined_call_operand.hbm [shape: f32[144,72], index: 10, kind: input, shape index: {}]   ;;  %s4766_s11 = inlined_call_operand.vmem [shape: f32[4,64,120], index: 11, kind: input, shape index: {}]   ;;  %s4767_s12 = inlined_call_operand.vmem [shape: f32[1,120], index: 12, kind: input, shape index: {}]   ;;  %s4768_s13 = inlined_call_operand.vmem [shape: f32[120,10], index: 13, kind: input, shape index: {}]   ;;  %s4769_s14 = inlined_call_operand.vmem [shape: f32[1,10], index: 14, kind: input, shape index: {}]   ;;  %s4770_s15 = inlined_call_operand.hbm [shape: f32[1,2,10], index: 15, kind: output, shape index: {}]  }
   0x1   :  { %4772 = sst [smem:[#allocation20_spill]] %s4770_s15 }
   0x2   :  { %20 = vsyncpa [#allocation4], 0 }
   0x3   :  { %21 = vsyncpa [#allocation7], 0 }
   0x4   :  { %22 = vsyncpa [#allocation10], 0 }
   0x5   :  { %23 = vsyncpa [#allocation13], 0 }
   0x6   :  { %24 = vsyncpa [#allocation5], 0  ;;  %s4007_s18 = smov [#allocation6]   ;;  %s3843_s22 = scalar_lea.hbm %s4756_s1, 5120 }
   0x7   :  { %s42_s19 = sshll.u32 %s4007_s18, 4  ;;  %p3844_p0 = scmp.ne.s32.totalorder %s4756_s1, %s3843_s22  ;;  %s43_s19 = int_to_ptr.vmem [resolvable:$true] %s42_s19 }
   0x8   :  { %p3847_p1 = scmp.lt.u32.totalorder %s3843_s22, %s4756_s1 }
   0xa   :  { %p3849_p2 = pnand %p3847_p1, %p3844_p0 }
   0xc   :  { %3852 = shalt.err (!%p3849_p2)
}
   0xd   :  { %s3853_s27 = scalar_lea.vmem %s43_s19, 5120  ;;  %p3858_p4 = scmp.lt.s32.totalorder %s43_s19, %s43_s19 }
   0xe   :  { %p3854_p3 = scmp.ne.s32.totalorder %s43_s19, %s3853_s27  ;;  %p3859_p5 = scmp.lt.s32.totalorder %s3853_s27, %s3853_s27 }
  0x10   :  { %p3860_p6 = por %p3859_p5, %p3858_p4 }
  0x12   :  { %p3861_p7 = pnand %p3860_p6, %p3854_p3 }
  0x14   :  { %3864 = shalt.err (!%p3861_p7)
}
  0x15   :  { %s4008_s28 = smov 256   ;;  %s4009_s29 = smov 16  }
  0x16   :  { %48 = dma.hbm_to_vmem [thread:$0]  %s4756_s1, 5120, %s43_s19, [#allocation7], %s4008_s28, %s4008_s28, %s4009_s29  }
  0x17   :  { %s4010_s17 = smov [#allocation9]   ;;  %s4011_s20 = smov [#allocation3]  }
  0x18   :  { %s72_s18 = sshll.u32 %s4010_s17, 4  ;;  %s30_s21 = sshll.u32 %s4011_s20, 4  ;;  %s73_s18 = int_to_ptr.vmem [resolvable:$true] %s72_s18  ;;  %s31_s21 = int_to_ptr.vmem [resolvable:$true] %s30_s21 }
  0x19   :  { %s3865_s24 = scalar_lea.hbm %s4761_s6, 512 }
  0x1a   :  { %p3866_p8 = scmp.ne.s32.totalorder %s4761_s6, %s3865_s24  ;;  %p3869_p9 = scmp.lt.u32.totalorder %s3865_s24, %s4761_s6 }
  0x1c   :  { %p3871_p10 = pnand %p3869_p9, %p3866_p8 }
  0x1e   :  { %3874 = shalt.err (!%p3871_p10)
}
  0x1f   :  { %s3875_s1 = scalar_lea.vmem %s73_s18, 512  ;;  %p3880_p12 = scmp.lt.s32.totalorder %s73_s18, %s73_s18 }
  0x20   :  { %p3876_p11 = scmp.ne.s32.totalorder %s73_s18, %s3875_s1  ;;  %p3881_p13 = scmp.lt.s32.totalorder %s3875_s1, %s3875_s1 }
  0x22   :  { %p3882_p0 = por %p3881_p13, %p3880_p12 }
  0x24   :  { %p3883_p1 = pnand %p3882_p0, %p3876_p11 }
  0x26   :  { %3886 = shalt.err (!%p3883_p1)
}
  0x27   :  { %s4012_s19 = smov 128   ;;  %s4013_s28 = smov 8  }
  0x28   :  { %78 = dma.hbm_to_vmem [thread:$0]  %s4761_s6, 512, %s73_s18, [#allocation10], %s4012_s19, %s4012_s19, %s4013_s28  }
  0x29   :  { %s3887_s17 = scalar_lea.hbm %s4755_s0, 896 }
  0x2a   :  { %p3888_p2 = scmp.ne.s32.totalorder %s4755_s0, %s3887_s17  ;;  %p3891_p3 = scmp.lt.u32.totalorder %s3887_s17, %s4755_s0 }
  0x2c   :  { %p3893_p4 = pnand %p3891_p3, %p3888_p2 }
  0x2e   :  { %3896 = shalt.err (!%p3893_p4)
}
  0x2f   :  { %s3897_s25 = scalar_lea.vmem %s31_s21, 896  ;;  %p3902_p6 = scmp.lt.s32.totalorder %s31_s21, %s31_s21 }
  0x30   :  { %p3898_p5 = scmp.ne.s32.totalorder %s31_s21, %s3897_s25  ;;  %p3903_p7 = scmp.lt.s32.totalorder %s3897_s25, %s3897_s25 }
  0x32   :  { %p3904_p8 = por %p3903_p7, %p3902_p6 }
  0x34   :  { %p3905_p9 = pnand %p3904_p8, %p3898_p5 }
  0x36   :  { %3908 = shalt.err (!%p3905_p9)
}
  0x37   :  { %36 = dma.hbm_to_vmem [thread:$0]  %s4755_s0, 896, %s31_s21, [#allocation4], %s4012_s19, %s4012_s19, %s4013_s28  }
  0x38   :  { %s4014_s26 = smov [#allocation8]   ;;  %s4015_s1 = smov [#allocation11]  }
  0x39   :  { %s56_s27 = sshll.u32 %s4014_s26, 4  ;;  %s88_s29 = sshll.u32 %s4015_s1, 4  ;;  %s57_s27 = int_to_ptr.vmem [resolvable:$true] %s56_s27  ;;  %s89_s29 = int_to_ptr.vmem [resolvable:$true] %s88_s29 }
  0x3a   :  { %s3909_s16 = scalar_lea.hbm %s4758_s3, 5760 }
  0x3b   :  { %p3910_p10 = scmp.ne.s32.totalorder %s4758_s3, %s3909_s16  ;;  %p3913_p11 = scmp.lt.u32.totalorder %s3909_s16, %s4758_s3 }
  0x3d   :  { %p3915_p12 = pnand %p3913_p11, %p3910_p10 }
  0x3f   :  { %3918 = shalt.err (!%p3915_p12)
}
  0x40   :  { %s3919_s0 = scalar_lea.vmem %s57_s27, 5760  ;;  %p3924_p0 = scmp.lt.s32.totalorder %s57_s27, %s57_s27 }
  0x41   :  { %p3920_p13 = scmp.ne.s32.totalorder %s57_s27, %s3919_s0  ;;  %p3925_p1 = scmp.lt.s32.totalorder %s3919_s0, %s3919_s0 }
  0x43   :  { %p3926_p2 = por %p3925_p1, %p3924_p0 }
  0x45   :  { %p3927_p3 = pnand %p3926_p2, %p3920_p13 }
  0x47   :  { %3930 = shalt.err (!%p3927_p3)
}
  0x48   :  { %62 = dma.hbm_to_vmem [thread:$0]  %s4758_s3, 5760, %s57_s27, [#allocation7], %s4012_s19, %s4012_s19, %s4013_s28  }
  0x49   :  { %s3931_s18 = scalar_lea.hbm %s4764_s9, 2304 }
  0x4a   :  { %p3932_p4 = scmp.ne.s32.totalorder %s4764_s9, %s3931_s18  ;;  %p3935_p5 = scmp.lt.u32.totalorder %s3931_s18, %s4764_s9 }
  0x4c   :  { %p3937_p6 = pnand %p3935_p5, %p3932_p4 }
  0x4e   :  { %3940 = shalt.err (!%p3937_p6)
}
  0x4f   :  { %s3941_s16 = scalar_lea.vmem %s89_s29, 2304  ;;  %p3946_p8 = scmp.lt.s32.totalorder %s89_s29, %s89_s29 }
  0x50   :  { %p3942_p7 = scmp.ne.s32.totalorder %s89_s29, %s3941_s16  ;;  %p3947_p9 = scmp.lt.s32.totalorder %s3941_s16, %s3941_s16 }
  0x52   :  { %p3948_p10 = por %p3947_p9, %p3946_p8 }
  0x54   :  { %p3949_p11 = pnand %p3948_p10, %p3942_p7 }
  0x56   :  { %3952 = shalt.err (!%p3949_p11)
}
  0x57   :  { %94 = dma.hbm_to_vmem [thread:$0]  %s4764_s9, 2304, %s89_s29, [#allocation10], %s4012_s19, %s4012_s19, %s4013_s28  }
  0x58   :  { %s4016_s17 = smov [#allocation12]   ;;  %s3953_s0 = scalar_lea.hbm %s4765_s10, 2304 }
  0x59   :  { %s100_s20 = sshll.u32 %s4016_s17, 4  ;;  %p3954_p12 = scmp.ne.s32.totalorder %s4765_s10, %s3953_s0  ;;  %s101_s20 = int_to_ptr.vmem [resolvable:$true] %s100_s20 }
  0x5a   :  { %p3957_p13 = scmp.lt.u32.totalorder %s3953_s0, %s4765_s10 }
  0x5c   :  { %p3959_p0 = pnand %p3957_p13, %p3954_p12 }
  0x5e   :  { %3962 = shalt.err (!%p3959_p0)
}
  0x5f   :  { %s3963_s18 = scalar_lea.vmem %s101_s20, 2304  ;;  %p3968_p2 = scmp.lt.s32.totalorder %s101_s20, %s101_s20 }
  0x60   :  { %p3964_p1 = scmp.ne.s32.totalorder %s101_s20, %s3963_s18  ;;  %p3969_p3 = scmp.lt.s32.totalorder %s3963_s18, %s3963_s18 }
  0x62   :  { %p3970_p4 = por %p3969_p3, %p3968_p2 }
  0x64   :  { %p3971_p5 = pnand %p3970_p4, %p3964_p1 }
  0x66   :  { %3974 = shalt.err (!%p3971_p5)
}
  0x67   :  { %106 = dma.hbm_to_vmem [thread:$0]  %s4765_s10, 2304, %s101_s20, [#allocation13], %s4012_s19, %s4012_s19, %s4013_s28  }
  0x68   :  { %3997 = dma.done.wait [#allocation4], 896  }
  0x69   :  { %3998 = vsyncadd [#allocation4], 4294966400 }
  0x6a   :  { %3999 = dma.done.wait [#allocation7], 10880  }
  0x6b   :  { %4000 = vsyncadd [#allocation7], 4294956416 }
  0x6c   :  { %4001 = dma.done.wait [#allocation10], 2816  }
  0x6d   :  { %4002 = vsyncadd [#allocation10], 4294964480 }
  0x6e   :  { %4003 = dma.done.wait [#allocation13], 2304  }
  0x6f   :  { %4004 = vsyncadd [#allocation13], 4294964992  ;;  %v4017_v0 = vmov 0.0   ;;  %vm186_vm0 = vcmask 1043456   ;;  %v157_v1 = vld [vmem:[#allocation6 + $0x48] sm:$0xff]  ;;  %v159_v2 = vld [vmem:[#allocation6 + $0x58] sm:$0xff] }
  0x70   :  { %257 = vmatprep.mubr.f32.mxu0 %v4017_v0  ;;  %899 = vmatprep.mubr.f32.mxu1 %v4017_v0  ;;  %v156_v3 = vld [vmem:[#allocation6 + $0x40] sm:$0xff]  ;;  %v3439_v4 = vpack.c.bf16 %v159_v2, %v157_v1  ;;  %v158_v5 = vld [vmem:[#allocation6 + $0x50] sm:$0xff]  ;;  %v161_v6 = vld [vmem:[#allocation6 + $0x68] sm:$0xff]  ;;  %vm4018_vm1 = vmmov 1   ;;  %vm164_vm3 = vcmask 228352   ;;  %vm956_vm4 = vcmask 424960  }
  0x71   :  { %v163_v7 = vld [vmem:[#allocation6 + $0x78] sm:$0xf]  ;;  %v3441_v8 = vpack.c.bf16 %v158_v5, %v156_v3  ;;  %vm4192_vm2 = vmpackc.low %vm186_vm0, %vm4018_vm1  ;;  %v160_v11 = vld [vmem:[#allocation6 + $0x60] sm:$0xff]  ;;  %vm1195_vm5 = vcmask 130048   ;;  %vm4020_vm6 = vmmov 0   ;;  %vm1404_vm7 = vcmask 588800  }
  0x72   :  { %v3443_v9 = vpack.c.bf16 %v163_v7, %v161_v6  ;;  %v162_v12 = vld [vmem:[#allocation6 + $0x70] sm:$0xf]  ;;  %3440 = vmatprep.subr.bf16.mxu0 %v3439_v4  ;;  %v141_v13 = vld [vmem:[#allocation6 + $0x8] sm:$0xff]  ;;  %v143_v14 = vld [vmem:[#allocation6 + $0x18] sm:$0xff]  ;;  %vm1941_vm8 = vcmask 195584   ;;  %vm2371_vm9 = vcmask 523264  }
  0x73   :  { %3442 = vmatpush1.bf16.msra.mxu0 %v3441_v8  ;;  %v3446_v15 = vpack.c.bf16 %v162_v12, %v160_v11  ;;  %v3449_v16 = vpack.c.bf16 %v143_v14, %v141_v13  ;;  %v140_v17 = vld [vmem:[#allocation6] sm:$0xff]  ;;  %v142_v18 = vld [vmem:[#allocation6 + $0x10] sm:$0xff]  ;;  %v145_v19 = vld [vmem:[#allocation6 + $0x28] sm:$0xff]  ;;  %vm2715_vm10 = vcmask 982016   ;;  %s4021_s23 = smov [#allocation14]   ;;  %vm2789_vm11 = vcmask 74752  }
  0x74   :  { %3445 = vmatprep.subr.msk.bf16.mxu0 %vm4192_vm2, %v3443_v9  ;;  %v147_v20 = vld [vmem:[#allocation6 + $0x38] sm:$0xf]  ;;  %v148_v21 = vld [vmem:[#allocation3 + $0x1] sm:$0xff]  ;;  %v3451_v22 = vpack.c.bf16 %v142_v18, %v140_v17  ;;  %v144_v24 = vld [vmem:[#allocation6 + $0x20] sm:$0xff]  ;;  %s2797_s0 = sshll.u32 %s4021_s23, 4  ;;  %s2798_s0 = int_to_ptr.vmem [resolvable:$true] %s2797_s0 }
  0x75   :  { %v3453_v23 = vpack.c.bf16 %v147_v20, %v145_v19  ;;  %v146_v25 = vld [vmem:[#allocation6 + $0x30] sm:$0xf]  ;;  %v443_v26 = vld [vmem:[#allocation6 + $0x88] sm:$0xff]  ;;  %v445_v27 = vld [vmem:[#allocation6 + $0x98] sm:$0xff]  ;;  %s3975_s21 = scalar_lea.vmem %s2798_s0, 32  ;;  %p3980_p7 = scmp.lt.s32.totalorder %s2798_s0, %s2798_s0 }
  0x76   :  { %v149_v28 = vld [vmem:[#allocation3 + $0x9] sm:$0xff]  ;;  %v3456_v29 = vpack.c.bf16 %v146_v25, %v144_v24  ;;  %v3459_v30 = vpack.c.bf16 %v445_v27, %v443_v26  ;;  %v150_v31 = vld [vmem:[#allocation3 + $0x11] sm:$0xff]  ;;  %v771_v32 = vld [vmem:[#allocation6 + $0x108] sm:$0xff]  ;;  %p3976_p6 = scmp.ne.s32.totalorder %s2798_s0, %s3975_s21  ;;  %p3981_p8 = scmp.lt.s32.totalorder %s3975_s21, %s3975_s21 }
  0x77   :  { %3448 = vmatpush1.bf16.msk.msra.mxu0 %vm4192_vm2, %v3446_v15  ;;  %v773_v33 = vld [vmem:[#allocation6 + $0x118] sm:$0xff]  ;;  %v770_v35 = vld [vmem:[#allocation6 + $0x100] sm:$0xff]  ;;  %v772_v36 = vld [vmem:[#allocation6 + $0x110] sm:$0xff] }
  0x78   :  { %3450 = vmatprep.subr.bf16.mxu0 %v3449_v16  ;;  %v4209_v34 = vpack.c.bf16 %v773_v33, %v771_v32  ;;  %v151_v37 = vld [vmem:[#allocation3 + $0x19] sm:$0xff]  ;;  %v4212_v38 = vpack.c.bf16 %v772_v36, %v770_v35  ;;  %v777_v40 = vld [vmem:[#allocation6 + $0x138] sm:$0xf]  ;;  %v776_v42 = vld [vmem:[#allocation6 + $0x130] sm:$0xf]  ;;  %p3982_p9 = por %p3981_p8, %p3980_p7 }
  0x79   :  { %v775_v39 = vld [vmem:[#allocation6 + $0x128] sm:$0xff]  ;;  %v774_v41 = vld [vmem:[#allocation6 + $0x120] sm:$0xff]  ;;  %v767_v46 = vld [vmem:[#allocation3 + $0x2c] sm:$0xff] }
  0x7a   :  { %2811 = vmatmul.mubr.msk.f32.vlgmr.msra.gmra.mrb[0].mxu0 %vm164_vm3, %v148_v21  ;;  %3768 = vmatprep.subr.bf16.mxu1 %v4209_v34  ;;  %v4216_v43 = vpack.c.bf16 %v777_v40, %v775_v39  ;;  %v4218_v44 = vpack.c.bf16 %v776_v42, %v774_v41  ;;  %v152_v45 = vld [vmem:[#allocation3 + $0x21] sm:$0xff]  ;;  %v153_v47 = vld [vmem:[#allocation3 + $0x29] sm:$0xff]  ;;  %v768_v48 = vld [vmem:[#allocation3 + $0x34] sm:$0xf]  ;;  %v928_v39 = vlaneseq  ;;  %p3983_p10 = pnand %p3982_p9, %p3976_p6 }
  0x7b   :  { %263 = vmatprep.mubr.f32.mxu0 %v4017_v0  ;;  %3452 = vmatpush1.bf16.msra.mxu0 %v3451_v22  ;;  %v154_v49 = vld [vmem:[#allocation3 + $0x31] sm:$0xf]  ;;  %v442_v50 = vld [vmem:[#allocation6 + $0x80] sm:$0xff]  ;;  %v444_v51 = vld [vmem:[#allocation6 + $0x90] sm:$0xff] }
  0x7c   :  { %3455 = vmatprep.subr.msk.bf16.mxu0 %vm4192_vm2, %v3453_v23  ;;  %3770 = vmatpush1.bf16.msra.mxu1 %v4212_v38  ;;  %v447_v52 = vld [vmem:[#allocation6 + $0xa8] sm:$0xff]  ;;  %v449_v53 = vld [vmem:[#allocation6 + $0xb8] sm:$0xf]  ;;  %v3461_v55 = vpack.c.bf16 %v444_v51, %v442_v50  ;;  %v446_v57 = vld [vmem:[#allocation6 + $0xa0] sm:$0xff] }
  0x7d   :  { %3769 = vmatprep.subr.msk.bf16.mxu1 %vm4192_vm2, %v4216_v43  ;;  %v133_v54 = vld [vmem:[#allocation3] sm:$0xff]  ;;  %v3463_v56 = vpack.c.bf16 %v449_v53, %v447_v52  ;;  %v448_v58 = vld [vmem:[#allocation6 + $0xb0] sm:$0xf]  ;;  %v609_v60 = vld [vmem:[#allocation6 + $0xd8] sm:$0xff] }
  0x7e   :  { %2812 = vmatmul.mubr.msk.f32.gmra.mrb[2].mxu0 %vm164_vm3, %v149_v28  ;;  %v607_v59 = vld [vmem:[#allocation6 + $0xc8] sm:$0xff]  ;;  %v134_v61 = vld [vmem:[#allocation3 + $0x8] sm:$0xff]  ;;  %v3466_v62 = vpack.c.bf16 %v448_v58, %v446_v57  ;;  %v135_v1 = vld [vmem:[#allocation3 + $0x10] sm:$0xff] }
  0x7f   :  { %269 = vmatprep.mubr.f32.mxu0 %v4017_v0  ;;  %3458 = vmatpush1.bf16.msk.msra.mxu0 %vm4192_vm2, %v3456_v29  ;;  %v3469_v63 = vpack.c.bf16 %v609_v60, %v607_v59  ;;  %v136_v2 = vld [vmem:[#allocation3 + $0x18] sm:$0xff]  ;;  %v137_v3 = vld [vmem:[#allocation3 + $0x20] sm:$0xff]  ;;  %v138_v4 = vld [vmem:[#allocation3 + $0x28] sm:$0xff] }
  0x80   :  { %3460 = vmatprep.subr.bf16.mxu0 %v3459_v30  ;;  %3771 = vmatpush1.bf16.msk.msra.mxu1 %vm4192_vm2, %v4218_v44  ;;  %v139_v5 = vld [vmem:[#allocation3 + $0x30] sm:$0xf]  ;;  %v606_v6 = vld [vmem:[#allocation6 + $0xc0] sm:$0xff]  ;;  %v608_v7 = vld [vmem:[#allocation6 + $0xd0] sm:$0xff] }
  0x81   :  { %v611_v8 = vld [vmem:[#allocation6 + $0xe8] sm:$0xff]  ;;  %v613_v9 = vld [vmem:[#allocation6 + $0xf8] sm:$0xf]  ;;  %v3471_v12 = vpack.c.bf16 %v608_v7, %v606_v6  ;;  %v610_v14 = vld [vmem:[#allocation6 + $0xe0] sm:$0xff] }
  0x82   :  { %2813 = vmatmul.mubr.msk.f32.gmra.mrb[4].mxu0 %vm164_vm3, %v150_v31  ;;  %v434_v11 = vld [vmem:[#allocation3 + $0x2] sm:$0xff]  ;;  %v3473_v13 = vpack.c.bf16 %v613_v9, %v611_v8  ;;  %v435_v16 = vld [vmem:[#allocation3 + $0xa] sm:$0xff]  ;;  %v436_v18 = vld [vmem:[#allocation3 + $0x12] sm:$0xff] }
  0x83   :  { %275 = vmatprep.mubr.f32.mxu0 %v4017_v0  ;;  %2852 = vmatmul.mubr.msk.f32.vlgmr.msra.gmra.mrb[0].mxu1 %vm164_vm3, %v767_v46  ;;  %v612_v15 = vld [vmem:[#allocation6 + $0xf0] sm:$0xf]  ;;  %v437_v19 = vld [vmem:[#allocation3 + $0x1a] sm:$0xff]  ;;  %v440_v22 = vld [vmem:[#allocation3 + $0x32] sm:$0xf] }
  0x84   :  { %905 = vmatprep.mubr.f32.mxu1 %v4017_v0  ;;  %v3476_v17 = vpack.c.bf16 %v612_v15, %v610_v14  ;;  %v438_v20 = vld [vmem:[#allocation3 + $0x22] sm:$0xff]  ;;  %v439_v21 = vld [vmem:[#allocation3 + $0x2a] sm:$0xff]  ;;  %v600_v25 = vld [vmem:[#allocation3 + $0x13] sm:$0xff] }
  0x85   :  { %v598_v23 = vld [vmem:[#allocation3 + $0x3] sm:$0xff]  ;;  %v599_v24 = vld [vmem:[#allocation3 + $0xb] sm:$0xff]  ;;  %v601_v26 = vld [vmem:[#allocation3 + $0x1b] sm:$0xff] }
  0x86   :  { %2814 = vmatmul.mubr.msk.f32.gmra.mrb[6].mxu0 %vm164_vm3, %v151_v37  ;;  %v602_v27 = vld [vmem:[#allocation3 + $0x23] sm:$0xff]  ;;  %v603_v28 = vld [vmem:[#allocation3 + $0x2b] sm:$0xff]  ;;  %v604_v10 = vld [vmem:[#allocation3 + $0x33] sm:$0xf] }
  0x87   :  { %281 = vmatprep.mubr.f32.mxu0 %v4017_v0  ;;  %2853 = vmatmul.mubr.msk.f32.gmra.mrb[2].mxu1 %vm164_vm3, %v768_v48  ;;  %v762_v29 = vld [vmem:[#allocation3 + $0x4] sm:$0xff]  ;;  %v763_v30 = vld [vmem:[#allocation3 + $0xc] sm:$0xff]  ;;  %v764_v31 = vld [vmem:[#allocation3 + $0x14] sm:$0xff] }
  0x88   :  { %1039 = vmatprep.mubr.f32.mxu1 %v4017_v0  ;;  %v765_v32 = vld [vmem:[#allocation3 + $0x1c] sm:$0xff]  ;;  %v766_v33 = vld [vmem:[#allocation3 + $0x24] sm:$0xff] }
  0x89   :  { %v926_v50 = vld [vmem:[%s4757_s2] sm:$0x3] }
  0x8a   :  { %2815 = vmatmul.mubr.msk.f32.gmra.mrb[8].mxu0 %vm164_vm3, %v152_v45 }
  0x8b   :  { %287 = vmatprep.mubr.f32.mxu0 %v4017_v0 }
  0x8e   :  { %2816 = vmatmul.mubr.msk.f32.gmra.mrb[10].mxu0 %vm164_vm3, %v153_v47 }
  0x8f   :  { %293 = vmatprep.mubr.f32.mxu0 %v4017_v0 }
  0x92   :  { %2817 = vmatmul.mubr.msk.f32.gmra.mrb[12].mxu0 %vm164_vm3, %v154_v49 }
  0x93   :  { %391 = vmatprep.mubr.f32.mxu0 %v4017_v0 }
  0x96   :  { %2820 = vmatmul.mubr.msk.f32.vlgmr.msra.gmra.mrb[0].mxu0 %vm164_vm3, %v133_v54 }
  0x97   :  { %397 = vmatprep.mubr.f32.mxu0 %v4017_v0  ;;  %3462 = vmatpush1.bf16.msra.mxu0 %v3461_v55 }
  0x98   :  { %3465 = vmatprep.subr.msk.bf16.mxu0 %vm4192_vm2, %v3463_v56 }
  0x9a   :  { %2821 = vmatmul.mubr.msk.f32.gmra.mrb[2].mxu0 %vm164_vm3, %v134_v61 }
  0x9b   :  { %403 = vmatprep.mubr.f32.mxu0 %v4017_v0  ;;  %3468 = vmatpush1.bf16.msk.msra.mxu0 %vm4192_vm2, %v3466_v62 }
  0x9c   :  { %3470 = vmatprep.subr.bf16.mxu0 %v3469_v63 }
  0x9e   :  { %2822 = vmatmul.mubr.msk.f32.gmra.mrb[4].mxu0 %vm164_vm3, %v135_v1 }
  0x9f   :  { %409 = vmatprep.mubr.f32.mxu0 %v4017_v0 }
  0xa2   :  { %2823 = vmatmul.mubr.msk.f32.gmra.mrb[6].mxu0 %vm164_vm3, %v136_v2 }
  0xa3   :  { %415 = vmatprep.mubr.f32.mxu0 %v4017_v0 }
  0xa6   :  { %2824 = vmatmul.mubr.msk.f32.gmra.mrb[8].mxu0 %vm164_vm3, %v137_v3 }
  0xa7   :  { %421 = vmatprep.mubr.f32.mxu0 %v4017_v0 }
  0xaa   :  { %2825 = vmatmul.mubr.msk.f32.gmra.mrb[10].mxu0 %vm164_vm3, %v138_v4 }
  0xab   :  { %427 = vmatprep.mubr.f32.mxu0 %v4017_v0 }
  0xae   :  { %2826 = vmatmul.mubr.msk.f32.gmra.mrb[12].mxu0 %vm164_vm3, %v139_v5 }
  0xaf   :  { %541 = vmatprep.mubr.f32.mxu0 %v4017_v0 }
  0xb2   :  { %2829 = vmatmul.mubr.msk.f32.vlgmr.msra.gmra.mrb[0].mxu0 %vm164_vm3, %v434_v11 }
  0xb3   :  { %547 = vmatprep.mubr.f32.mxu0 %v4017_v0  ;;  %3472 = vmatpush1.bf16.msra.mxu0 %v3471_v12 }
  0xb4   :  { %3475 = vmatprep.subr.msk.bf16.mxu0 %vm4192_vm2, %v3473_v13 }
  0xb6   :  { %2830 = vmatmul.mubr.msk.f32.gmra.mrb[2].mxu0 %vm164_vm3, %v435_v16 }
  0xb7   :  { %553 = vmatprep.mubr.f32.mxu0 %v4017_v0  ;;  %3478 = vmatpush1.bf16.msk.msra.mxu0 %vm4192_vm2, %v3476_v17 }
  0xb8   :  { %3480 = vmatprep.subr.bf16.mxu0 %v4209_v34 }
  0xba   :  { %2831 = vmatmul.mubr.msk.f32.gmra.mrb[4].mxu0 %vm164_vm3, %v436_v18 }
  0xbb   :  { %559 = vmatprep.mubr.f32.mxu0 %v4017_v0 }
  0xbe   :  { %2832 = vmatmul.mubr.msk.f32.gmra.mrb[6].mxu0 %vm164_vm3, %v437_v19 }
  0xbf   :  { %565 = vmatprep.mubr.f32.mxu0 %v4017_v0 }
  0xc2   :  { %2833 = vmatmul.mubr.msk.f32.gmra.mrb[8].mxu0 %vm164_vm3, %v438_v20 }
  0xc3   :  { %571 = vmatprep.mubr.f32.mxu0 %v4017_v0 }
  0xc6   :  { %2834 = vmatmul.mubr.msk.f32.gmra.mrb[10].mxu0 %vm164_vm3, %v439_v21 }
  0xc7   :  { %577 = vmatprep.mubr.f32.mxu0 %v4017_v0 }
  0xca   :  { %2835 = vmatmul.mubr.msk.f32.gmra.mrb[12].mxu0 %vm164_vm3, %v440_v22  ;;  %v952_v22 = vld [vmem:[%s4760_s5] sm:$0xff] }
  0xcb   :  { %705 = vmatprep.mubr.f32.mxu0 %v4017_v0 }
  0xce   :  { %2838 = vmatmul.mubr.msk.f32.vlgmr.msra.gmra.mrb[0].mxu0 %vm164_vm3, %v598_v23  ;;  %v953_v23 = vld [vmem:[%s4760_s5 + $0x8] sm:$0xff] }
  0xcf   :  { %711 = vmatprep.mubr.f32.mxu0 %v4017_v0  ;;  %3482 = vmatpush1.bf16.msra.mxu0 %v4212_v38  ;;  %v4019_v38 = vmov 0.0|0.0  }
  0xd0   :  { %3485 = vmatprep.subr.msk.bf16.mxu0 %vm4192_vm2, %v4216_v43 }
  0xd2   :  { %2839 = vmatmul.mubr.msk.f32.gmra.mrb[2].mxu0 %vm164_vm3, %v599_v24  ;;  %v954_v24 = vld [vmem:[%s4760_s5 + $0x10] sm:$0xff] }
  0xd3   :  { %717 = vmatprep.mubr.f32.mxu0 %v4017_v0  ;;  %3488 = vmatpush1.bf16.msk.msra.mxu0 %vm4192_vm2, %v4218_v44  ;;  %v929_v44 = vshrl.u32 %v928_v39, 7  ;;  %v1184_v39 = vld [vmem:[#allocation11 + $0x38] sm:$0xff] }
  0xd4   :  { %3591 = vmatprep.subr.bf16.mxu0 %v4019_v38 }
  0xd5   :  { %v930_v49 = vsub.s32 0, %v929_v44  ;;  %v934_v51 = vsub.s32 1, %v929_v44 }
  0xd6   :  { %2840 = vmatmul.mubr.msk.f32.gmra.mrb[4].mxu0 %vm164_vm3, %v600_v25  ;;  %v955_v25 = vld [vmem:[%s4760_s5 + $0x18] sm:$0xff] }
  0xd7   :  { %723 = vmatprep.mubr.f32.mxu0 %v4017_v0  ;;  %v931_v54 = vrot.slane %v926_v50, %v930_v49  ;;  %v935_v55 = vrot.slane %v926_v50, %v934_v51  ;;  %v1190_v49 = vld [vmem:[#allocation11 + $0x68] sm:$0xff]  ;;  %v1191_v51 = vld [vmem:[#allocation11 + $0x70] sm:$0xff] }
  0xda   :  { %2841 = vmatmul.mubr.msk.f32.gmra.mrb[6].mxu0 %vm164_vm3, %v601_v26  ;;  %v1177_v26 = vld [vmem:[#allocation11] sm:$0xff] }
  0xdb   :  { %729 = vmatprep.mubr.f32.mxu0 %v4017_v0 }
  0xde   :  { %2842 = vmatmul.mubr.msk.f32.gmra.mrb[8].mxu0 %vm164_vm3, %v602_v27  ;;  %v1178_v27 = vld [vmem:[#allocation11 + $0x8] sm:$0xff] }
  0xdf   :  { %735 = vmatprep.mubr.f32.mxu0 %v4017_v0 }
  0xe2   :  { %2843 = vmatmul.mubr.msk.f32.gmra.mrb[10].mxu0 %vm164_vm3, %v603_v28  ;;  %v1064_v28 = vld [vmem:[#allocation9] sm:$0xff] }
  0xe3   :  { %741 = vmatprep.mubr.f32.mxu0 %v4017_v0 }
  0xe6   :  { %2844 = vmatmul.mubr.msk.f32.gmra.mrb[12].mxu0 %vm164_vm3, %v604_v10  ;;  %v4333_v10 = vpack.c.bf16 %v1178_v27, %v1177_v26 }
  0xe7   :  { %869 = vmatprep.mubr.f32.mxu0 %v4017_v0 }
  0xea   :  { %2847 = vmatmul.mubr.msk.f32.vlgmr.msra.gmra.mrb[0].mxu0 %vm164_vm3, %v762_v29  ;;  %v1179_v29 = vld [vmem:[#allocation11 + $0x10] sm:$0xff] }
  0xeb   :  { %875 = vmatprep.mubr.f32.mxu0 %v4017_v0 }
  0xee   :  { %2848 = vmatmul.mubr.msk.f32.gmra.mrb[2].mxu0 %vm164_vm3, %v763_v30  ;;  %v1180_v30 = vld [vmem:[#allocation11 + $0x18] sm:$0xff] }
  0xef   :  { %881 = vmatprep.mubr.f32.mxu0 %v4017_v0 }
  0xf2   :  { %2849 = vmatmul.mubr.msk.f32.gmra.mrb[4].mxu0 %vm164_vm3, %v764_v31  ;;  %v1065_v31 = vld [vmem:[#allocation9 + $0x8] sm:$0xff] }
  0xf3   :  { %887 = vmatprep.mubr.f32.mxu0 %v4017_v0 }
  0xf6   :  { %2850 = vmatmul.mubr.msk.f32.gmra.mrb[6].mxu0 %vm164_vm3, %v765_v32  ;;  %v4339_v32 = vpack.c.bf16 %v1180_v30, %v1179_v29 }
  0xf7   :  { %893 = vmatprep.mubr.f32.mxu0 %v4017_v0 }
  0xfa   :  { %2851 = vmatmul.mubr.msk.f32.gmra.mrb[8].mxu0 %vm164_vm3, %v766_v33  ;;  %v1181_v33 = vld [vmem:[#allocation11 + $0x20] sm:$0xff] }
  0xfb   :  { %3167 = vmatprep.mubr.msk.f32.mxu0 %vm4020_vm6, %v4017_v0 }
 0x156   :  { %v901_v34 = vpop.f32.mrb[0].mxu1 }
 0x157   :  { %v903_v35 = vpop.f32.mrb[1].mxu1 }
 0x15a   :  { %v907_v36 = vpop.f32.mrb[2].mxu1 }
 0x15b   :  { %v909_v37 = vpop.f32.mrb[3].mxu1 }
 0x1b5   :  { %v737_v40 = vpop.f32.mrb[10].mxu0 }
 0x1b6   :  { %v3772_v41 = vadd.f32 %v901_v34, %v737_v40  ;;  %v739_v42 = vpop.f32.mrb[11].mxu0  ;;  %v1182_v34 = vld [vmem:[#allocation11 + $0x28] sm:$0xff]  ;;  %v1067_v40 = vld [vmem:[#allocation9 + $0x18] sm:$0xff] }
 0x1b7   :  { %v3773_v43 = vadd.f32 %v903_v35, %v739_v42  ;;  %v1066_v35 = vld [vmem:[#allocation9 + $0x10] sm:$0xff]  ;;  %v1185_v42 = vld [vmem:[#allocation11 + $0x40] sm:$0xff] }
 0x1b8   :  { %v948_v13 = vadd.f32 %v3772_v41, %v931_v54 }
 0x1b9   :  { %v743_v45 = vpop.f32.mrb[12].mxu0  ;;  %v949_v16 = vadd.f32 %v3773_v43, %v935_v55  ;;  %v1186_v43 = vld [vmem:[#allocation11 + $0x48] sm:$0xff] }
 0x1ba   :  { %v3774_v46 = vadd.f32 %v907_v36, %v743_v45  ;;  %v745_v47 = vpop.f32.mrb[13].mxu0  ;;  %v4345_v36 = vpack.c.bf16 %v1182_v34, %v1181_v33  ;;  %v4357_v44 = vpack.c.bf16 %v1186_v43, %v1185_v42  ;;  %v1187_v45 = vld [vmem:[#allocation11 + $0x50] sm:$0xff]  ;;  %v1302_v33 = vld [vmem:[#allocation12 + $0x48] sm:$0xff] }
 0x1bb   :  { %v3775_v48 = vadd.f32 %v909_v37, %v745_v47  ;;  %v1183_v37 = vld [vmem:[#allocation11 + $0x30] sm:$0xff]  ;;  %v1306_v42 = vld [vmem:[#allocation12 + $0x68] sm:$0xff] }
 0x1bc   :  { %v950_v21 = vadd.f32 %v3774_v46, %v931_v54  ;;  %v4351_v41 = vpack.c.bf16 %v1184_v39, %v1183_v37  ;;  %v1188_v46 = vld [vmem:[#allocation11 + $0x58] sm:$0xff]  ;;  %v1304_v37 = vld [vmem:[#allocation12 + $0x58] sm:$0xff] }
 0x1bd   :  { %v871_v52 = vpop.f32.mrb[0].mxu0  ;;  %v951_v20 = vadd.f32 %v3775_v48, %v935_v55  ;;  %v4361_v47 = vpack.c.bf16 %v1188_v46, %v1187_v45  ;;  %v1189_v48 = vld [vmem:[#allocation11 + $0x60] sm:$0xff]  ;;  %v1308_v46 = vld [vmem:[#allocation12 + $0x78] sm:$0xff] }
 0x1be   :  { %v873_v53 = vpop.f32.mrb[1].mxu0  ;;  %v938_v57 = vadd.f32 %v931_v54, %v871_v52  ;;  %v4365_v50 = vpack.c.bf16 %v1190_v49, %v1189_v48  ;;  %v1192_v52 = vld [vmem:[#allocation11 + $0x78] sm:$0xff]  ;;  %v1307_v45 = vld [vmem:[#allocation12 + $0x70] sm:$0xff]  ;;  %v1309_v49 = vld [vmem:[#allocation12 + $0x80] sm:$0xff] }
 0x1bf   :  { %v939_v60 = vadd.f32 %v935_v55, %v873_v53  ;;  %v4369_v53 = vpack.c.bf16 %v1192_v52, %v1191_v51  ;;  %v4409_v48 = vpack.c.bf16 %v1308_v46, %v1307_v45  ;;  %v1310_v51 = vld [vmem:[#allocation12 + $0x88] sm:$0xff] }
 0x1c0   :  { %v3565_v52 = vpack.c.bf16 %v1310_v51, %v1309_v49 }
 0x1c1   :  { %v877_v56 = vpop.f32.mrb[2].mxu0 }
 0x1c2   :  { %v940_v58 = vadd.f32 %v931_v54, %v877_v56  ;;  %v879_v59 = vpop.f32.mrb[3].mxu0 }
 0x1c3   :  { %v941_v61 = vadd.f32 %v935_v55, %v879_v59 }
 0x1c4   :  { %v3491_v62 = vpack.c.bf16 %v940_v58, %v938_v57 }
 0x1c5   :  { %v3489_v63 = vpack.c.bf16 %v941_v61, %v939_v60  ;;  %v883_v1 = vpop.f32.mrb[4].mxu0 }
 0x1c6   :  { %v885_v2 = vpop.f32.mrb[5].mxu0  ;;  %v942_v4 = vadd.f32 %v931_v54, %v883_v1 }
 0x1c7   :  { %3490 = vmatprep.subr.bf16.mxu1 %v3489_v63  ;;  %v943_v7 = vadd.f32 %v935_v55, %v885_v2  ;;  %v1293_v2 = vld [vmem:[#allocation12] sm:$0xff] }
 0x1c8   :  { %3492 = vmatpush1.bf16.msra.mxu1 %v3491_v62 }
 0x1c9   :  { %v889_v3 = vpop.f32.mrb[6].mxu0 }
 0x1ca   :  { %v944_v5 = vadd.f32 %v931_v54, %v889_v3  ;;  %v891_v6 = vpop.f32.mrb[7].mxu0  ;;  %v1294_v3 = vld [vmem:[#allocation12 + $0x8] sm:$0xff] }
 0x1cb   :  { %v945_v8 = vadd.f32 %v935_v55, %v891_v6 }
 0x1cc   :  { %v3495_v9 = vpack.c.bf16 %v944_v5, %v942_v4 }
 0x1cd   :  { %v3493_v11 = vpack.c.bf16 %v945_v8, %v943_v7  ;;  %v895_v12 = vpop.f32.mrb[8].mxu0  ;;  %v4376_v8 = vpack.c.bf16 %v1294_v3, %v1293_v2  ;;  %v1429_v3 = vld [vmem:[#allocation8 + $0x68] sm:$0xff] }
 0x1ce   :  { %v946_v14 = vadd.f32 %v931_v54, %v895_v12  ;;  %v897_v15 = vpop.f32.mrb[9].mxu0  ;;  %v1193_v54 = vld [vmem:[#allocation11 + $0x80] sm:$0xff] }
 0x1cf   :  { %v947_v17 = vadd.f32 %v935_v55, %v897_v15  ;;  %3494 = vmatprep.subr.bf16.mxu1 %v3493_v11  ;;  %v1194_v55 = vld [vmem:[#allocation11 + $0x88] sm:$0xff] }
 0x1d0   :  { %v3499_v18 = vpack.c.bf16 %v948_v13, %v946_v14  ;;  %3496 = vmatpush1.bf16.msra.mxu1 %v3495_v9  ;;  %v3538_v56 = vpack.c.bf16 %v1194_v55, %v1193_v54  ;;  %v1425_v54 = vld [vmem:[#allocation8 + $0x48] sm:$0xff]  ;;  %v1426_v55 = vld [vmem:[#allocation8 + $0x50] sm:$0xff] }
 0x1d1   :  { %v3497_v19 = vpack.c.bf16 %v949_v16, %v947_v17  ;;  %v1297_v17 = vld [vmem:[#allocation12 + $0x20] sm:$0xff] }
 0x1d3   :  { %3498 = vmatprep.subr.bf16.mxu1 %v3497_v19 }
 0x1d4   :  { %3500 = vmatpush1.bf16.msra.mxu1 %v3499_v18 }
 0x1d5   :  { %2854 = vmatprep.subr.msk.mxu1 %vm186_vm0, %v951_v20 }
 0x1d8   :  { %2855 = vmatpush1.msk.msra.mxu1 %vm186_vm0, %v950_v21 }
 0x1d9   :  { %2856 = vmatmul.mubr.msk.f32.vlgmr.msra.gmra.mrb[4].mxu1 %vm956_vm4, %v952_v22  ;;  %3502 = vmatprep.subr.bf16.mxu1 %v3489_v63 }
 0x1da   :  { %3504 = vmatpush1.bf16.msra.mxu1 %v3491_v62  ;;  %1045 = vmatprep.mubr.f32.mxu1 %v4017_v0 }
 0x1db   :  { %3506 = vmatprep.subr.bf16.mxu1 %v3493_v11  ;;  %v1296_v11 = vld [vmem:[#allocation12 + $0x18] sm:$0xff] }
 0x1dd   :  { %2857 = vmatmul.mubr.msk.f32.gmra.mrb[6].mxu1 %vm956_vm4, %v953_v23 }
 0x1de   :  { %3508 = vmatpush1.bf16.msra.mxu1 %v3495_v9  ;;  %1051 = vmatprep.mubr.f32.mxu1 %v4017_v0  ;;  %v1295_v9 = vld [vmem:[#allocation12 + $0x10] sm:$0xff] }
 0x1df   :  { %3510 = vmatprep.subr.bf16.mxu1 %v3497_v19  ;;  %v4381_v16 = vpack.c.bf16 %v1296_v11, %v1295_v9  ;;  %v1431_v11 = vld [vmem:[#allocation8 + $0x78] sm:$0xff] }
 0x1e1   :  { %2858 = vmatmul.mubr.msk.f32.gmra.mrb[8].mxu1 %vm956_vm4, %v954_v24  ;;  %v1299_v24 = vld [vmem:[#allocation12 + $0x30] sm:$0xff] }
 0x1e2   :  { %3512 = vmatpush1.bf16.msra.mxu1 %v3499_v18  ;;  %1057 = vmatprep.mubr.f32.mxu1 %v4017_v0  ;;  %v1298_v18 = vld [vmem:[#allocation12 + $0x28] sm:$0xff] }
 0x1e3   :  { %2860 = vmatprep.subr.msk.mxu1 %vm186_vm0, %v951_v20  ;;  %v4386_v23 = vpack.c.bf16 %v1298_v18, %v1297_v17  ;;  %v1433_v18 = vld [vmem:[#allocation8 + $0x88] sm:$0xff] }
 0x1e5   :  { %2859 = vmatmul.mubr.msk.f32.gmra.mrb[10].mxu1 %vm956_vm4, %v955_v25  ;;  %v1300_v25 = vld [vmem:[#allocation12 + $0x38] sm:$0xff] }
 0x1e6   :  { %2861 = vmatpush1.msk.msra.mxu1 %vm186_vm0, %v950_v21  ;;  %1144 = vmatprep.mubr.f32.mxu1 %v4017_v0  ;;  %v4391_v30 = vpack.c.bf16 %v1300_v25, %v1299_v24 }
 0x1e7   :  { %3513 = vmatprep.subr.bf16.mxu1 %v4019_v38 }
 0x1e9   :  { %2862 = vmatmul.mubr.msk.f32.vlgmr.msra.gmra.mrb[12].mxu1 %vm956_vm4, %v1064_v28 }
 0x1ea   :  { %1150 = vmatprep.mubr.f32.mxu1 %v4017_v0  ;;  %3515 = vmatpush1.bf16.msra.mxu1 %v4333_v10 }
 0x1eb   :  { %3516 = vmatprep.subr.bf16.mxu1 %v4019_v38 }
 0x1ed   :  { %2863 = vmatmul.mubr.msk.f32.gmra.mrb[14].mxu1 %vm956_vm4, %v1065_v31  ;;  %v1301_v31 = vld [vmem:[#allocation12 + $0x40] sm:$0xff] }
 0x1ee   :  { %1156 = vmatprep.mubr.f32.mxu1 %v4017_v0  ;;  %3518 = vmatpush1.bf16.msra.mxu1 %v4339_v32  ;;  %v4397_v34 = vpack.c.bf16 %v1302_v33, %v1301_v31 }
 0x1ef   :  { %3519 = vmatprep.subr.bf16.mxu1 %v4019_v38 }
 0x1f1   :  { %2864 = vmatmul.mubr.msk.f32.gmra.mrb[16].mxu1 %vm956_vm4, %v1066_v35  ;;  %v1303_v35 = vld [vmem:[#allocation12 + $0x50] sm:$0xff] }
 0x1f2   :  { %1162 = vmatprep.mubr.f32.mxu1 %v4017_v0  ;;  %3521 = vmatpush1.bf16.msra.mxu1 %v4345_v36  ;;  %v4401_v39 = vpack.c.bf16 %v1304_v37, %v1303_v35 }
 0x1f3   :  { %3522 = vmatprep.subr.bf16.mxu1 %v4019_v38 }
 0x1f5   :  { %2865 = vmatmul.mubr.msk.f32.gmra.mrb[18].mxu1 %vm956_vm4, %v1067_v40  ;;  %v1305_v40 = vld [vmem:[#allocation12 + $0x60] sm:$0xff] }
 0x1f6   :  { %3524 = vmatpush1.bf16.msra.mxu1 %v4351_v41  ;;  %v4405_v43 = vpack.c.bf16 %v1306_v42, %v1305_v40 }
 0x1f7   :  { %3525 = vmatprep.subr.bf16.mxu1 %v4019_v38 }
 0x1fa   :  { %3527 = vmatpush1.bf16.msra.mxu1 %v4357_v44 }
 0x1fb   :  { %3528 = vmatprep.subr.bf16.mxu1 %v4019_v38 }
 0x1fe   :  { %3530 = vmatpush1.bf16.msra.mxu1 %v4361_v47 }
 0x1ff   :  { %3531 = vmatprep.subr.bf16.mxu1 %v4019_v38 }
 0x202   :  { %3533 = vmatpush1.bf16.msra.mxu1 %v4365_v50 }
 0x203   :  { %3534 = vmatprep.subr.bf16.mxu1 %v4019_v38 }
 0x206   :  { %3536 = vmatpush1.bf16.msra.mxu1 %v4369_v53 }
 0x207   :  { %3537 = vmatprep.subr.bf16.mxu1 %v4019_v38 }
 0x20a   :  { %3539 = vmatpush1.bf16.msra.mxu1 %v3538_v56  ;;  %v1616_v56 = vld [vmem:[#allocation8 + $0x90] sm:$0xff] }
 0x20b   :  { %3540 = vmatprep.subr.bf16.mxu1 %v4019_v38 }
 0x2ac   :  { %v1041_v57 = vpop.f32.mrb[4].mxu1 }
 0x2ad   :  { %v1043_v58 = vpop.f32.mrb[5].mxu1 }
 0x2b0   :  { %v1047_v59 = vpop.f32.mrb[6].mxu1 }
 0x2b1   :  { %v1049_v60 = vpop.f32.mrb[7].mxu1 }
 0x2b4   :  { %v1053_v61 = vpop.f32.mrb[8].mxu1 }
 0x2b5   :  { %v1055_v62 = vpop.f32.mrb[9].mxu1 }
 0x2b8   :  { %v1059_v63 = vpop.f32.mrb[10].mxu1 }
 0x2b9   :  { %v1061_v1 = vpop.f32.mrb[11].mxu1 }
 0x2bc   :  { %v1146_v4 = vpop.f32.mrb[12].mxu1 }
 0x2bd   :  { %v4374_v5 = vmax.f32 %v1041_v57, %v1146_v4  ;;  %v1148_v6 = vpop.f32.mrb[13].mxu1  ;;  %v3568_v57 = vpack.c.bf16 %v1426_v55, %v1425_v54  ;;  %v1430_v4 = vld [vmem:[#allocation8 + $0x70] sm:$0xff]  ;;  %v1413_v55 = vld [vmem:[#allocation8 + $0x8] sm:$0xff] }
 0x2be   :  { %v1170_v7 = vmax.f32 %v1043_v58, %v1148_v6  ;;  %v1617_v58 = vld [vmem:[#allocation8 + $0x98] sm:$0xff]  ;;  %v3574_v6 = vpack.c.bf16 %v1430_v4, %v1429_v3  ;;  %v1828_v3 = vld [vmem:[#allocation8 + $0x130] sm:$0xff] }
 0x2bf   :  { %v1829_v4 = vld [vmem:[#allocation8 + $0x138] sm:$0xff] }
 0x2c0   :  { %v1152_v12 = vpop.f32.mrb[14].mxu1  ;;  %2866 = vmatprep.mubr.msk.f32.mxu1 %vm1195_vm5, %v1170_v7 }
 0x2c1   :  { %v1171_v13 = vmax.f32 %v1047_v59, %v1152_v12  ;;  %v1154_v14 = vpop.f32.mrb[15].mxu1  ;;  %1273 = vmatmul.mubr.f32.vlgmr.msra.gmra.mrb[20].mxu1 %v4374_v5  ;;  %v3592_v59 = vpack.c.bf16 %v1617_v58, %v1616_v56  ;;  %v1432_v12 = vld [vmem:[#allocation8 + $0x80] sm:$0xff] }
 0x2c2   :  { %v1172_v15 = vmax.f32 %v1049_v60, %v1154_v14  ;;  %3542 = vmatpush1.bf16.msra.mxu1 %v4376_v8  ;;  %v1427_v60 = vld [vmem:[#allocation8 + $0x58] sm:$0xff]  ;;  %v3577_v14 = vpack.c.bf16 %v1432_v12, %v1431_v11  ;;  %v1826_v56 = vld [vmem:[#allocation8 + $0x120] sm:$0xff]  ;;  %v1417_v12 = vld [vmem:[#allocation8 + $0x28] sm:$0xff] }
 0x2c3   :  { %3543 = vmatprep.subr.bf16.mxu1 %v4019_v38  ;;  %3593 = vmatpush3.bf16.msra.mxu0 %v3592_v59  ;;  %v1416_v11 = vld [vmem:[#allocation8 + $0x20] sm:$0xff] }
 0x2c4   :  { %v1158_v19 = vpop.f32.mrb[16].mxu1  ;;  %2867 = vmatprep.mubr.msk.f32.mxu1 %vm1195_vm5, %v1172_v15  ;;  %3594 = vmatprep.subr.bf16.mxu0 %v4019_v38 }
 0x2c5   :  { %v1173_v20 = vmax.f32 %v1053_v61, %v1158_v19  ;;  %v1160_v21 = vpop.f32.mrb[17].mxu1  ;;  %1278 = vmatmul.mubr.f32.gmra.mrb[22].mxu1 %v1171_v13  ;;  %v1428_v61 = vld [vmem:[#allocation8 + $0x60] sm:$0xff]  ;;  %v1624_v19 = vld [vmem:[#allocation8 + $0xd0] sm:$0xff] }
 0x2c6   :  { %v1174_v22 = vmax.f32 %v1055_v62, %v1160_v21  ;;  %3545 = vmatpush1.bf16.msra.mxu1 %v4381_v16  ;;  %v1618_v62 = vld [vmem:[#allocation8 + $0xa0] sm:$0xff] }
 0x2c7   :  { %3546 = vmatprep.subr.bf16.mxu1 %v4019_v38 }
 0x2c8   :  { %v1164_v26 = vpop.f32.mrb[18].mxu1  ;;  %2868 = vmatprep.mubr.msk.f32.mxu1 %vm1195_vm5, %v1174_v22 }
 0x2c9   :  { %v1175_v27 = vmax.f32 %v1059_v63, %v1164_v26  ;;  %v1166_v28 = vpop.f32.mrb[19].mxu1  ;;  %1283 = vmatmul.mubr.f32.gmra.mrb[24].mxu1 %v1173_v20  ;;  %v3571_v63 = vpack.c.bf16 %v1428_v61, %v1427_v60 }
 0x2ca   :  { %v1176_v29 = vmax.f32 %v1061_v1, %v1166_v28  ;;  %3548 = vmatpush1.bf16.msra.mxu1 %v4386_v23  ;;  %v1619_v1 = vld [vmem:[#allocation8 + $0xa8] sm:$0xff] }
 0x2cb   :  { %3549 = vmatprep.subr.bf16.mxu1 %v4019_v38  ;;  %v3595_v2 = vpack.c.bf16 %v1619_v1, %v1618_v62 }
 0x2cc   :  { %2869 = vmatprep.mubr.msk.f32.mxu1 %vm1195_vm5, %v1176_v29 }
 0x2cd   :  { %1288 = vmatmul.mubr.f32.gmra.mrb[26].mxu1 %v1175_v27  ;;  %3596 = vmatpush3.bf16.msra.mxu0 %v3595_v2  ;;  %v1415_v2 = vld [vmem:[#allocation8 + $0x18] sm:$0xff] }
 0x2ce   :  { %3551 = vmatpush1.bf16.msra.mxu1 %v4391_v30  ;;  %2870 = vmatprep.mubr.msk.f32.mxu1 %vm1195_vm5, %v1170_v7  ;;  %v1621_v7 = vld [vmem:[#allocation8 + $0xb8] sm:$0xff] }
 0x2cf   :  { %3552 = vmatprep.subr.bf16.mxu1 %v4019_v38  ;;  %3597 = vmatprep.subr.bf16.mxu0 %v4019_v38 }
 0x2d2   :  { %3554 = vmatpush1.bf16.msra.mxu1 %v4397_v34 }
 0x2d3   :  { %3555 = vmatprep.subr.bf16.mxu1 %v4019_v38 }
 0x2d6   :  { %3557 = vmatpush1.bf16.msra.mxu1 %v4401_v39 }
 0x2d7   :  { %3558 = vmatprep.subr.bf16.mxu1 %v4019_v38 }
 0x2da   :  { %3560 = vmatpush1.bf16.msra.mxu1 %v4405_v43 }
 0x2db   :  { %3561 = vmatprep.subr.bf16.mxu1 %v4019_v38 }
 0x2de   :  { %3563 = vmatpush1.bf16.msra.mxu1 %v4409_v48 }
 0x2df   :  { %3564 = vmatprep.subr.bf16.mxu1 %v4019_v38 }
 0x2e2   :  { %3566 = vmatpush1.bf16.msra.mxu1 %v3565_v52  ;;  %v1412_v52 = vld [vmem:[#allocation8] sm:$0xff] }
 0x2e3   :  { %3567 = vmatprep.subr.bf16.mxu1 %v4019_v38  ;;  %v3580_v61 = vpack.c.bf16 %v1413_v55, %v1412_v52  ;;  %v1726_v52 = vld [vmem:[#allocation8 + $0x100] sm:$0xff] }
 0x2e5   :  { %1376 = vmatmul.mubr.f32.vlgmr.msra.gmra.mrb[28].mxu1 %v4374_v5  ;;  %v1620_v5 = vld [vmem:[#allocation8 + $0xb0] sm:$0xff] }
 0x2e6   :  { %2871 = vmatprep.mubr.msk.f32.mxu1 %vm1195_vm5, %v1172_v15  ;;  %3569 = vmatpush3.bf16.msra.mxu1 %v3568_v57  ;;  %v3598_v9 = vpack.c.bf16 %v1621_v7, %v1620_v5  ;;  %v1623_v15 = vld [vmem:[#allocation8 + $0xc8] sm:$0xff] }
 0x2e7   :  { %3570 = vmatprep.subr.bf16.mxu1 %v4019_v38  ;;  %v1827_v57 = vld [vmem:[#allocation8 + $0x128] sm:$0xff] }
 0x2e8   :  { %3599 = vmatpush3.bf16.msra.mxu0 %v3598_v9  ;;  %v3616_v62 = vpack.c.bf16 %v1827_v57, %v1826_v56  ;;  %v3619_v9 = vpack.c.bf16 %v1829_v4, %v1828_v3  ;;  %v1727_v57 = vld [vmem:[#allocation8 + $0x108] sm:$0xff] }
 0x2e9   :  { %1381 = vmatmul.mubr.f32.gmra.mrb[30].mxu1 %v1171_v13  ;;  %v1622_v13 = vld [vmem:[#allocation8 + $0xc0] sm:$0xff]  ;;  %3600 = vmatprep.subr.bf16.mxu0 %v4019_v38 }
 0x2ea   :  { %2872 = vmatprep.mubr.msk.f32.mxu1 %vm1195_vm5, %v1174_v22  ;;  %3572 = vmatpush3.bf16.msra.mxu1 %v3571_v63  ;;  %v3601_v17 = vpack.c.bf16 %v1623_v15, %v1622_v13  ;;  %v1414_v63 = vld [vmem:[#allocation8 + $0x10] sm:$0xff]  ;;  %v1830_v13 = vld [vmem:[#allocation8 + $0x140] sm:$0xff] }
 0x2eb   :  { %3573 = vmatprep.subr.bf16.mxu1 %v4019_v38  ;;  %v3583_v7 = vpack.c.bf16 %v1415_v2, %v1414_v63 }
 0x2ec   :  { %3602 = vmatpush3.bf16.msra.mxu0 %v3601_v17 }
 0x2ed   :  { %1386 = vmatmul.mubr.f32.gmra.mrb[32].mxu1 %v1173_v20  ;;  %3165 = vmatprep.subr.mxu0 %v4017_v0 }
 0x2ee   :  { %2873 = vmatprep.mubr.msk.f32.mxu1 %vm1195_vm5, %v1176_v29  ;;  %3575 = vmatpush3.bf16.msra.mxu1 %v3574_v6 }
 0x2ef   :  { %3576 = vmatprep.subr.bf16.mxu1 %v4019_v38 }
 0x2f0   :  { %3166 = vmatpush3.msra.mxu0 %v1624_v19 }
 0x2f1   :  { %1391 = vmatmul.mubr.f32.gmra.mrb[34].mxu1 %v1175_v27  ;;  %3615 = vmatprep.subr.bf16.mxu0 %v4019_v38 }
 0x2f2   :  { %3578 = vmatpush3.bf16.msra.mxu1 %v3577_v14  ;;  %3113 = vmatprep.mubr.msk.f32.mxu1 %vm4020_vm6, %v4017_v0  ;;  %v1831_v14 = vld [vmem:[#allocation8 + $0x148] sm:$0xff] }
 0x2f3   :  { %3111 = vmatprep.subr.mxu1 %v4017_v0  ;;  %v3622_v19 = vpack.c.bf16 %v1831_v14, %v1830_v13 }
 0x2f6   :  { %3112 = vmatpush3.msra.mxu1 %v1433_v18  ;;  %v3586_v18 = vpack.c.bf16 %v1417_v12, %v1416_v11 }
 0x2f7   :  { %3579 = vmatprep.subr.bf16.mxu1 %v4019_v38 }
 0x394   :  { %v1274_v20 = vpop.f32.mrb[20].mxu1 }
 0x395   :  { %v1276_v21 = vpop.f32.mrb[21].mxu1 }
 0x396   :  { %v1419_v21 = vld [vmem:[#allocation8 + $0x38] sm:$0xff] }
 0x398   :  { %v1279_v22 = vpop.f32.mrb[22].mxu1 }
 0x399   :  { %v1281_v24 = vpop.f32.mrb[23].mxu1 }
 0x39a   :  { %v1833_v24 = vld [vmem:[#allocation8 + $0x158] sm:$0xff] }
 0x39c   :  { %v1284_v25 = vpop.f32.mrb[24].mxu1 }
 0x39d   :  { %v1286_v26 = vpop.f32.mrb[25].mxu1 }
 0x3a0   :  { %v1289_v27 = vpop.f32.mrb[26].mxu1 }
 0x3a1   :  { %v1291_v28 = vpop.f32.mrb[27].mxu1 }
 0x3b8   :  { %v1377_v29 = vpop.f32.mrb[28].mxu1 }
 0x3b9   :  { %v1396_v31 = vmax.f32 %v1274_v20, %v1377_v29  ;;  %v1379_v33 = vpop.f32.mrb[29].mxu1  ;;  %v1418_v20 = vld [vmem:[#allocation8 + $0x30] sm:$0xff]  ;;  %v1721_v29 = vld [vmem:[#allocation8 + $0xd8] sm:$0xff] }
 0x3ba   :  { %v1420_v33 = vld [vmem:[#allocation8 + $0x40] sm:$0xff] }
 0x3bb   :  { %v1400_v35 = vmax.f32 %v1396_v31, 0.0  ;;  %v1722_v31 = vld [vmem:[#allocation8 + $0xe0] sm:$0xff] }
 0x3bc   :  { %v1382_v37 = vpop.f32.mrb[30].mxu1 }
 0x3bd   :  { %1405 = vst.msk [vmem:[#allocation2] sm:$0xff] %vm1404_vm7, %v1400_v35  ;;  %v1397_v40 = vmax.f32 %v1279_v22, %v1382_v37  ;;  %v1384_v42 = vpop.f32.mrb[31].mxu1  ;;  %v1832_v22 = vld [vmem:[#allocation8 + $0x150] sm:$0xff]  ;;  %v1834_v35 = vld [vmem:[#allocation8 + $0x160] sm:$0xff]  ;;  %v3604_v37 = vpack.c.bf16 %v1722_v31, %v1721_v29 }
 0x3be   :  { %v3625_v28 = vpack.c.bf16 %v1833_v24, %v1832_v22  ;;  %v1724_v42 = vld [vmem:[#allocation8 + $0xf0] sm:$0xff] }
 0x3bf   :  { %v1401_v45 = vmax.f32 %v1397_v40, 0.0  ;;  %v1723_v40 = vld [vmem:[#allocation8 + $0xe8] sm:$0xff] }
 0x3c0   :  { %v1387_v46 = vpop.f32.mrb[32].mxu1 }
 0x3c1   :  { %1406 = vst.msk [vmem:[#allocation2 + $0x8] sm:$0xff] %vm1404_vm7, %v1401_v45  ;;  %v1398_v49 = vmax.f32 %v1284_v25, %v1387_v46  ;;  %v1389_v51 = vpop.f32.mrb[33].mxu1 }
 0x3c2   :  { %v1725_v51 = vld [vmem:[#allocation8 + $0xf8] sm:$0xff] }
 0x3c3   :  { %v1402_v54 = vmax.f32 %v1398_v49, 0.0  ;;  %v3607_v49 = vpack.c.bf16 %v1724_v42, %v1723_v40  ;;  %v3610_v56 = vpack.c.bf16 %v1726_v52, %v1725_v51 }
 0x3c4   :  { %v1392_v58 = vpop.f32.mrb[34].mxu1  ;;  %v1409_v45 = vld [vmem:[#allocation2] sm:$0xff] }
 0x3c5   :  { %1407 = vst.msk [vmem:[#allocation2 + $0x10] sm:$0xff] %vm1404_vm7, %v1402_v54  ;;  %v1399_v59 = vmax.f32 %v1289_v27, %v1392_v58  ;;  %v1394_v60 = vpop.f32.mrb[35].mxu1  ;;  %v3589_v27 = vpack.c.bf16 %v1419_v21, %v1418_v20  ;;  %v1728_v58 = vld [vmem:[#allocation8 + $0x110] sm:$0xff] }
 0x3c6   :  { %v3613_v60 = vpack.c.bf16 %v1728_v58, %v1727_v57 }
 0x3c7   :  { %v1403_v1 = vmax.f32 %v1399_v59, 0.0 }
 0x3c8   :  { %v1421_v5 = vld [vmem:[#allocation2 + $0x1] sm:$0xff] }
 0x3c9   :  { %v1612_v6 = vld [vmem:[#allocation2 + $0x2] sm:$0xff]  ;;  %1408 = vst.msk [vmem:[#allocation2 + $0x18] sm:$0xff] %vm1404_vm7, %v1403_v1  ;;  %3114 = vmatmul.mubr.msk.f32.vlgmr.msra.gmra.mrb[36].mxu1 %vm1404_vm7, %v1421_v5 }
 0x3ca   :  { %3168 = vmatmul.mubr.msk.f32.vlgmr.msra.gmra.mrb[14].mxu0 %vm1404_vm7, %v1612_v6  ;;  %3581 = vmatpush3.bf16.msra.mxu1 %v3580_v61  ;;  %v1822_v46 = vld [vmem:[#allocation2 + $0x4] sm:$0xff]  ;;  %v1729_v61 = vld [vmem:[#allocation8 + $0x118] sm:$0xff] }
 0x3cb   :  { %3617 = vmatpush3.bf16.msra.mxu0 %v3616_v62  ;;  %3116 = vmatprep.mubr.msk.f32.mxu1 %vm4020_vm6, %v4017_v0  ;;  %v1410_v54 = vld [vmem:[#allocation2 + $0x8] sm:$0xff] }
 0x3cc   :  { %3582 = vmatprep.subr.bf16.mxu1 %v4019_v38  ;;  %3170 = vmatprep.mubr.msk.f32.mxu0 %vm4020_vm6, %v4017_v0  ;;  %v1422_v15 = vld [vmem:[#allocation2 + $0x9] sm:$0xff] }
 0x3cd   :  { %3618 = vmatprep.subr.bf16.mxu0 %v4019_v38  ;;  %v1613_v17 = vld [vmem:[#allocation2 + $0xa] sm:$0xff]  ;;  %3117 = vmatmul.mubr.msk.f32.gmra.mrb[38].mxu1 %vm1404_vm7, %v1422_v15 }
 0x3ce   :  { %3171 = vmatmul.mubr.msk.f32.gmra.mrb[16].mxu0 %vm1404_vm7, %v1613_v17  ;;  %3584 = vmatpush3.bf16.msra.mxu1 %v3583_v7  ;;  %v1823_v55 = vld [vmem:[#allocation2 + $0xc] sm:$0xff] }
 0x3cf   :  { %3620 = vmatpush3.bf16.msra.mxu0 %v3619_v9  ;;  %3119 = vmatprep.mubr.msk.f32.mxu1 %vm4020_vm6, %v4017_v0  ;;  %v1411_v59 = vld [vmem:[#allocation2 + $0x10] sm:$0xff] }
 0x3d0   :  { %3585 = vmatprep.subr.bf16.mxu1 %v4019_v38  ;;  %3173 = vmatprep.mubr.msk.f32.mxu0 %vm4020_vm6, %v4017_v0  ;;  %v1423_v25 = vld [vmem:[#allocation2 + $0x11] sm:$0xff] }
 0x3d1   :  { %3621 = vmatprep.subr.bf16.mxu0 %v4019_v38  ;;  %v1614_v26 = vld [vmem:[#allocation2 + $0x12] sm:$0xff]  ;;  %3120 = vmatmul.mubr.msk.f32.gmra.mrb[40].mxu1 %vm1404_vm7, %v1423_v25 }
 0x3d2   :  { %3174 = vmatmul.mubr.msk.f32.gmra.mrb[18].mxu0 %vm1404_vm7, %v1614_v26  ;;  %3587 = vmatpush3.bf16.msra.mxu1 %v3586_v18 }
 0x3d3   :  { %3623 = vmatpush3.bf16.msra.mxu0 %v3622_v19  ;;  %3588 = vmatprep.subr.bf16.mxu1 %v4019_v38 }
 0x3d4   :  { %3624 = vmatprep.subr.bf16.mxu0 %v4019_v38  ;;  %3140 = vmatprep.mubr.msk.f32.mxu1 %vm4020_vm6, %v4017_v0 }
 0x3d5   :  { %3221 = vmatprep.mubr.msk.f32.mxu0 %vm4020_vm6, %v4017_v0 }
 0x3d6   :  { %3590 = vmatpush3.bf16.msra.mxu1 %v3589_v27 }
 0x3d7   :  { %3626 = vmatpush3.bf16.msra.mxu0 %v3625_v28  ;;  %3138 = vmatprep.subr.mxu1 %v4017_v0 }
 0x3d8   :  { %3219 = vmatprep.subr.mxu0 %v4017_v0 }
 0x3da   :  { %3139 = vmatpush3.msra.mxu1 %v1420_v33 }
 0x3db   :  { %3220 = vmatpush3.msra.mxu0 %v1834_v35  ;;  %3141 = vmatmul.mubr.msk.f32.vlgmr.msra.gmra.mrb[42].mxu1 %vm1404_vm7, %v1409_v45 }
 0x3dc   :  { %3603 = vmatprep.subr.bf16.mxu1 %v4019_v38  ;;  %3222 = vmatmul.mubr.msk.f32.vlgmr.msra.gmra.mrb[20].mxu0 %vm1404_vm7, %v1822_v46  ;;  %v2889_v46 = vld [vmem:[%s4759_s4] ss:$0 sm:$0xff] }
 0x3dd   :  { %3605 = vmatpush3.bf16.msra.mxu1 %v3604_v37  ;;  %3143 = vmatprep.mubr.msk.f32.mxu1 %vm4020_vm6, %v4017_v0 }
 0x3de   :  { %3224 = vmatprep.mubr.msk.f32.mxu0 %vm4020_vm6, %v4017_v0  ;;  %3606 = vmatprep.subr.bf16.mxu1 %v4019_v38 }
 0x3df   :  { %3636 = vmatprep.subr.bf16.mxu0 %v4333_v10  ;;  %3144 = vmatmul.mubr.msk.f32.gmra.mrb[44].mxu1 %vm1404_vm7, %v1410_v54 }
 0x3e0   :  { %3638 = vmatpush3.bf16.msra.mxu0 %v4333_v10  ;;  %3146 = vmatprep.mubr.msk.f32.mxu1 %vm4020_vm6, %v4017_v0  ;;  %v1824_v10 = vld [vmem:[#allocation2 + $0x14] sm:$0xff] }
 0x3e1   :  { %3225 = vmatmul.mubr.msk.f32.gmra.mrb[22].mxu0 %vm1404_vm7, %v1823_v55  ;;  %3608 = vmatpush3.bf16.msra.mxu1 %v3607_v49 }
 0x3e2   :  { %3227 = vmatprep.mubr.msk.f32.mxu0 %vm4020_vm6, %v4017_v0  ;;  %3609 = vmatprep.subr.bf16.mxu1 %v4019_v38 }
 0x3e3   :  { %3640 = vmatprep.subr.bf16.mxu0 %v4339_v32  ;;  %3147 = vmatmul.mubr.msk.f32.gmra.mrb[46].mxu1 %vm1404_vm7, %v1411_v59 }
 0x3e4   :  { %3642 = vmatpush3.bf16.msra.mxu0 %v4339_v32  ;;  %3194 = vmatprep.mubr.msk.f32.mxu1 %vm4020_vm6, %v4017_v0  ;;  %v1717_v32 = vld [vmem:[#allocation2 + $0x3] sm:$0xff] }
 0x3e5   :  { %3228 = vmatmul.mubr.msk.f32.gmra.mrb[24].mxu0 %vm1404_vm7, %v1824_v10  ;;  %3611 = vmatpush3.bf16.msra.mxu1 %v3610_v56  ;;  %v1938_v10 = vld [vmem:[%s4762_s7 + $0x8] sm:$0xff] }
 0x3e6   :  { %3612 = vmatprep.subr.bf16.mxu1 %v4019_v38  ;;  %3644 = vmatprep.subr.bf16.mxu0 %v4345_v36 }
 0x3e8   :  { %3646 = vmatpush3.bf16.msra.mxu0 %v4345_v36  ;;  %v1718_v36 = vld [vmem:[#allocation2 + $0xb] sm:$0xff] }
 0x3e9   :  { %3614 = vmatpush3.bf16.msra.mxu1 %v3613_v60  ;;  %3648 = vmatprep.subr.bf16.mxu0 %v4351_v41  ;;  %v1939_v60 = vld [vmem:[%s4762_s7 + $0x10] sm:$0xff] }
 0x3ea   :  { %3192 = vmatprep.subr.mxu1 %v4017_v0 }
 0x3ec   :  { %3650 = vmatpush3.bf16.msra.mxu0 %v4351_v41  ;;  %v1719_v41 = vld [vmem:[#allocation2 + $0x13] sm:$0xff] }
 0x3ed   :  { %3193 = vmatpush3.msra.mxu1 %v1729_v61  ;;  %3652 = vmatprep.subr.bf16.mxu0 %v4357_v44  ;;  %v1940_v61 = vld [vmem:[%s4762_s7 + $0x18] sm:$0xff] }
 0x3ee   :  { %3195 = vmatmul.mubr.msk.f32.vlgmr.msra.gmra.mrb[48].mxu1 %vm1404_vm7, %v1717_v32  ;;  %v2039_v32 = vld [vmem:[%s4763_s8] sm:$0xff] }
 0x3ef   :  { %3197 = vmatprep.mubr.msk.f32.mxu1 %vm4020_vm6, %v4017_v0 }
 0x3f0   :  { %3654 = vmatpush3.bf16.msra.mxu0 %v4357_v44  ;;  %v1937_v44 = vld [vmem:[%s4762_s7] sm:$0xff] }
 0x3f1   :  { %3656 = vmatprep.subr.bf16.mxu0 %v4361_v47 }
 0x3f2   :  { %3198 = vmatmul.mubr.msk.f32.gmra.mrb[50].mxu1 %vm1404_vm7, %v1718_v36  ;;  %v2040_v36 = vld [vmem:[%s4763_s8 + $0x8] sm:$0xff] }
 0x3f3   :  { %3200 = vmatprep.mubr.msk.f32.mxu1 %vm4020_vm6, %v4017_v0 }
 0x3f4   :  { %3658 = vmatpush3.bf16.msra.mxu0 %v4361_v47 }
 0x3f5   :  { %3660 = vmatprep.subr.bf16.mxu0 %v4365_v50 }
 0x3f6   :  { %3201 = vmatmul.mubr.msk.f32.gmra.mrb[52].mxu1 %vm1404_vm7, %v1719_v41  ;;  %v2041_v41 = vld [vmem:[%s4763_s8 + $0x10] sm:$0xff] }
 0x3f7   :  { %3236 = vmatprep.mubr.msk.f32.mxu1 %vm1941_vm8, %v1937_v44  ;;  %v2042_v44 = vld [vmem:[%s4763_s8 + $0x18] sm:$0xff] }
 0x3f8   :  { %3662 = vmatpush3.bf16.msra.mxu0 %v4365_v50 }
 0x3f9   :  { %3664 = vmatprep.subr.bf16.mxu0 %v4369_v53 }
 0x3fc   :  { %3666 = vmatpush3.bf16.msra.mxu0 %v4369_v53 }
 0x3fd   :  { %3699 = vmatprep.subr.bf16.mxu0 %v4019_v38 }
 0x49c   :  { %v1509_v47 = vpop.f32.mrb[36].mxu1 }
 0x49d   :  { %v1700_v62 = vpop.f32.mrb[14].mxu0  ;;  %v3115_v63 = vpop.f32.mrb[37].mxu1 }
 0x49e   :  { %v3169_v1 = vpop.f32.mrb[15].mxu0 }
 0x4a0   :  { %v1514_v2 = vpop.f32.mrb[38].mxu1 }
 0x4a1   :  { %v1705_v3 = vpop.f32.mrb[16].mxu0  ;;  %v3118_v50 = vpop.f32.mrb[39].mxu1 }
 0x4a2   :  { %v3172_v4 = vpop.f32.mrb[17].mxu0  ;;  %v2900_v50 = vld [vmem:[%s4766_s11 + $0x50] sm:$0xff] }
 0x4a3   :  { %v2901_v4 = vld [vmem:[%s4766_s11 + $0x58] sm:$0xff] }
 0x4a4   :  { %v1519_v5 = vpop.f32.mrb[40].mxu1 }
 0x4a5   :  { %v1710_v6 = vpop.f32.mrb[18].mxu0  ;;  %v3121_v53 = vpop.f32.mrb[41].mxu1 }
 0x4a6   :  { %v3175_v7 = vpop.f32.mrb[19].mxu0 }
 0x4ae   :  { %v1598_v9 = vpop.f32.mrb[42].mxu1 }
 0x4af   :  { %v1599_v11 = vadd.f32 %v1598_v9, %v1509_v47  ;;  %v1910_v12 = vpop.f32.mrb[20].mxu0  ;;  %v3142_v13 = vpop.f32.mrb[43].mxu1 }
 0x4b0   :  { %v3223_v14 = vpop.f32.mrb[21].mxu0 }
 0x4b1   :  { %v1714_v15 = vadd.f32 %v1700_v62, %v1599_v11  ;;  %v2902_v14 = vld [vmem:[%s4766_s11 + $0x60] sm:$0xff] }
 0x4b2   :  { %v1603_v17 = vpop.f32.mrb[44].mxu1 }
 0x4b3   :  { %v1604_v18 = vadd.f32 %v1603_v17, %v1514_v2  ;;  %v3145_v20 = vpop.f32.mrb[45].mxu1  ;;  %v2358_v17 = vld [vmem:[%s4766_s11 + $0x20] sm:$0xff] }
 0x4b4   :  { %v1915_v19 = vpop.f32.mrb[22].mxu0 }
 0x4b5   :  { %v3226_v21 = vpop.f32.mrb[23].mxu0  ;;  %v1715_v22 = vadd.f32 %v1705_v3, %v1604_v18  ;;  %v2359_v18 = vld [vmem:[%s4766_s11 + $0x28] sm:$0xff] }
 0x4b6   :  { %v1608_v24 = vpop.f32.mrb[46].mxu1  ;;  %v3718_v20 = vpack.c.bf16 %v2359_v18, %v2358_v17  ;;  %v2904_v21 = vld [vmem:[%s4766_s11 + $0x70] sm:$0xff]  ;;  %v2701_v17 = vld [vmem:[%s4768_s13 + $0x40] sm:$0xff]  ;;  %v2702_v18 = vld [vmem:[%s4768_s13 + $0x48] sm:$0xff] }
 0x4b7   :  { %v1609_v25 = vadd.f32 %v1608_v24, %v1519_v5  ;;  %v3148_v27 = vpop.f32.mrb[47].mxu1  ;;  %v2356_v5 = vld [vmem:[%s4766_s11 + $0x10] sm:$0xff] }
 0x4b8   :  { %v1920_v26 = vpop.f32.mrb[24].mxu0 }
 0x4b9   :  { %v3229_v28 = vpop.f32.mrb[25].mxu0  ;;  %v1716_v29 = vadd.f32 %v1710_v6, %v1609_v25  ;;  %v2357_v6 = vld [vmem:[%s4766_s11 + $0x18] sm:$0xff]  ;;  %v2360_v25 = vld [vmem:[%s4766_s11 + $0x30] sm:$0xff] }
 0x4ba   :  { %v3715_v13 = vpack.c.bf16 %v2357_v6, %v2356_v5  ;;  %v2908_v28 = vld [vmem:[%s4766_s11 + $0x80] sm:$0xff]  ;;  %v2695_v5 = vld [vmem:[%s4768_s13 + $0x10] sm:$0xff]  ;;  %v2696_v6 = vld [vmem:[%s4768_s13 + $0x18] sm:$0xff] }
 0x4c1   :  { %v1805_v31 = vpop.f32.mrb[48].mxu1 }
 0x4c2   :  { %v1819_v33 = vadd.f32 %v1805_v31, %v1714_v15  ;;  %v3196_v35 = vpop.f32.mrb[49].mxu1  ;;  %v2903_v15 = vld [vmem:[%s4766_s11 + $0x68] sm:$0xff] }
 0x4c3   :  { %v2917_v35 = vld [vmem:[%s4766_s11 + $0xc0] sm:$0xff] }
 0x4c4   :  { %v1924_v37 = vadd.f32 %v1910_v12, %v1819_v33  ;;  %v3703_v12 = vpack.c.bf16 %v2901_v4, %v2900_v50 }
 0x4c5   :  { %v1810_v40 = vpop.f32.mrb[50].mxu1 }
 0x4c6   :  { %v1820_v42 = vadd.f32 %v1810_v40, %v1715_v22  ;;  %v3199_v45 = vpop.f32.mrb[51].mxu1  ;;  %v1934_v52 = vadd.f32 %v2889_v46, %v1924_v37  ;;  %v2905_v22 = vld [vmem:[%s4766_s11 + $0x78] sm:$0xff]  ;;  %v2918_v37 = vld [vmem:[%s4766_s11 + $0xc8] sm:$0xff] }
 0x4c7   :  { %v3709_v24 = vpack.c.bf16 %v2905_v22, %v2904_v21  ;;  %v2704_v21 = vld [vmem:[%s4768_s13 + $0x58] sm:$0xff] }
 0x4c8   :  { %v1925_v49 = vadd.f32 %v1915_v19, %v1820_v42  ;;  %v3706_v19 = vpack.c.bf16 %v2903_v15, %v2902_v14  ;;  %v2700_v14 = vld [vmem:[%s4768_s13 + $0x38] sm:$0xff] }
 0x4c9   :  { %v1815_v51 = vpop.f32.mrb[52].mxu1 }
 0x4ca   :  { %v1935_v54 = vadd.f32 %v2889_v46, %v1925_v49  ;;  %v1821_v55 = vadd.f32 %v1815_v51, %v1716_v29  ;;  %v3202_v56 = vpop.f32.mrb[53].mxu1  ;;  %v2909_v29 = vld [vmem:[%s4766_s11 + $0x88] sm:$0xff] }
 0x4cb   :  { %v3724_v49 = vpack.c.bf16 %v2909_v29, %v2908_v28 }
 0x4cc   :  { %v3627_v57 = vpack.c.bf16 %v1935_v54, %v1934_v52  ;;  %v1926_v58 = vadd.f32 %v1920_v26, %v1821_v55  ;;  %v2361_v26 = vld [vmem:[%s4766_s11 + $0x38] sm:$0xff]  ;;  %v3736_v52 = vpack.c.bf16 %v2918_v37, %v2917_v35  ;;  %v2910_v54 = vld [vmem:[%s4766_s11 + $0x90] sm:$0xff] }
 0x4cd   :  { %v3721_v27 = vpack.c.bf16 %v2361_v26, %v2360_v25  ;;  %v2911_v55 = vld [vmem:[%s4766_s11 + $0x98] sm:$0xff]  ;;  %v2706_v25 = vld [vmem:[%s4768_s13 + $0x68] sm:$0xff] }
 0x4ce   :  { %v1936_v59 = vadd.f32 %v2889_v46, %v1926_v58  ;;  %3628 = vmatprep.subr.bf16.mxu1 %v3627_v57 }
 0x4cf   :  { %3630 = vmatpush3.bf16.msra.mxu1 %v3627_v57 }
 0x4d0   :  { %3234 = vmatprep.subr.mxu1 %v1936_v59 }
 0x4d3   :  { %3235 = vmatpush3.msra.mxu1 %v1936_v59 }
 0x4d4   :  { %3237 = vmatmul.mubr.msk.f32.vlgmr.msra.gmra.mrb[54].mxu1 %vm1941_vm8, %v1938_v10  ;;  %3632 = vmatprep.subr.bf16.mxu1 %v3627_v57  ;;  %v2920_v10 = vld [vmem:[%s4766_s11 + $0xd8] sm:$0xff] }
 0x4d5   :  { %3634 = vmatpush3.bf16.msra.mxu1 %v3627_v57  ;;  %3239 = vmatprep.mubr.msk.f32.mxu1 %vm1941_vm8, %v1939_v60 }
 0x4d6   :  { %3246 = vmatprep.subr.mxu1 %v1936_v59 }
 0x4d8   :  { %3240 = vmatmul.mubr.msk.f32.gmra.mrb[56].mxu1 %vm1941_vm8, %v1940_v61 }
 0x4d9   :  { %3247 = vmatpush3.msra.mxu1 %v1936_v59  ;;  %3248 = vmatprep.mubr.msk.f32.mxu1 %vm1941_vm8, %v2039_v32  ;;  %v2919_v59 = vld [vmem:[%s4766_s11 + $0xd0] sm:$0xff] }
 0x4da   :  { %3668 = vmatprep.subr.bf16.mxu1 %v4376_v8 }
 0x4dc   :  { %3249 = vmatmul.mubr.msk.f32.vlgmr.msra.gmra.mrb[58].mxu1 %vm1941_vm8, %v2040_v36 }
 0x4dd   :  { %3251 = vmatprep.mubr.msk.f32.mxu1 %vm1941_vm8, %v2041_v41  ;;  %3670 = vmatpush3.bf16.msra.mxu1 %v4376_v8  ;;  %v3727_v41 = vpack.c.bf16 %v2911_v55, %v2910_v54 }
 0x4de   :  { %3672 = vmatprep.subr.bf16.mxu1 %v4381_v16 }
 0x4e0   :  { %3252 = vmatmul.mubr.msk.f32.gmra.mrb[60].mxu1 %vm1941_vm8, %v2042_v44  ;;  %v3739_v44 = vpack.c.bf16 %v2920_v10, %v2919_v59 }
 0x4e1   :  { %3674 = vmatpush3.bf16.msra.mxu1 %v4381_v16 }
 0x4e2   :  { %3676 = vmatprep.subr.bf16.mxu1 %v4386_v23 }
 0x4e5   :  { %3678 = vmatpush3.bf16.msra.mxu1 %v4386_v23 }
 0x4e6   :  { %3680 = vmatprep.subr.bf16.mxu1 %v4391_v30 }
 0x4e9   :  { %3682 = vmatpush3.bf16.msra.mxu1 %v4391_v30 }
 0x4ea   :  { %3684 = vmatprep.subr.bf16.mxu1 %v4397_v34 }
 0x4ed   :  { %3686 = vmatpush3.bf16.msra.mxu1 %v4397_v34  ;;  %v2898_v34 = vld [vmem:[%s4766_s11 + $0x40] sm:$0xff] }
 0x4ee   :  { %3688 = vmatprep.subr.bf16.mxu1 %v4401_v39 }
 0x4f1   :  { %3690 = vmatpush3.bf16.msra.mxu1 %v4401_v39  ;;  %v2899_v39 = vld [vmem:[%s4766_s11 + $0x48] sm:$0xff] }
 0x4f2   :  { %3692 = vmatprep.subr.bf16.mxu1 %v4405_v43  ;;  %v3700_v2 = vpack.c.bf16 %v2899_v39, %v2898_v34 }
 0x4f5   :  { %3694 = vmatpush3.bf16.msra.mxu1 %v4405_v43  ;;  %v2354_v43 = vld [vmem:[%s4766_s11] sm:$0xff] }
 0x4f6   :  { %3696 = vmatprep.subr.bf16.mxu1 %v4409_v48 }
 0x4f9   :  { %3698 = vmatpush3.bf16.msra.mxu1 %v4409_v48  ;;  %v2355_v48 = vld [vmem:[%s4766_s11 + $0x8] sm:$0xff] }
 0x4fa   :  { %3711 = vmatprep.subr.bf16.mxu1 %v4019_v38  ;;  %v3712_v3 = vpack.c.bf16 %v2355_v48, %v2354_v43  ;;  %v2914_v43 = vld [vmem:[%s4766_s11 + $0xb0] sm:$0xff]  ;;  %v2915_v48 = vld [vmem:[%s4766_s11 + $0xb8] sm:$0xff] }
 0x5a7   :  { %v3238_v8 = vpop.f32.mrb[54].mxu1 }
 0x5a8   :  { %v2020_v16 = vpop.f32.mrb[55].mxu1 }
 0x5ab   :  { %v3241_v23 = vpop.f32.mrb[56].mxu1 }
 0x5ac   :  { %v2030_v30 = vpop.f32.mrb[57].mxu1 }
 0x5af   :  { %v3250_v47 = vpop.f32.mrb[58].mxu1 }
 0x5b0   :  { %v2141_v62 = vmax.f32 %v3238_v8, %v3250_v47  ;;  %v2121_v63 = vpop.f32.mrb[59].mxu1  ;;  %v2912_v8 = vld [vmem:[%s4766_s11 + $0xa0] sm:$0xff]  ;;  %v2923_v47 = vld [vmem:[%s4766_s11 + $0xf0] sm:$0xff] }
 0x5b1   :  { %v2140_v1 = vmax.f32 %v2020_v16, %v2121_v63  ;;  %v2913_v16 = vld [vmem:[%s4766_s11 + $0xa8] sm:$0xff]  ;;  %v3733_v63 = vpack.c.bf16 %v2915_v48, %v2914_v43 }
 0x5b2   :  { %v3730_v34 = vpack.c.bf16 %v2913_v16, %v2912_v8 }
 0x5b3   :  { %v3253_v53 = vpop.f32.mrb[60].mxu1  ;;  %3286 = vmatprep.mubr.f32.mxu0 %v2140_v1  ;;  %3324 = vmatprep.mubr.f32.mxu1 %v2140_v1 }
 0x5b4   :  { %v2143_v7 = vmax.f32 %v3241_v23, %v3253_v53  ;;  %v2131_v9 = vpop.f32.mrb[61].mxu1  ;;  %3287 = vmatmul.mubr.f32.vlgmr.msra.gmra.mrb[26].mxu0 %v2141_v62  ;;  %3325 = vmatmul.mubr.f32.vlgmr.msra.gmra.mrb[62].mxu1 %v2141_v62  ;;  %v2921_v23 = vld [vmem:[%s4766_s11 + $0xe0] sm:$0xff]  ;;  %v2924_v62 = vld [vmem:[%s4766_s11 + $0xf8] sm:$0xff] }
 0x5b5   :  { %v2142_v11 = vmax.f32 %v2030_v30, %v2131_v9  ;;  %3701 = vmatpush3.bf16.msra.mxu0 %v3700_v2  ;;  %3713 = vmatpush3.bf16.msra.mxu1 %v3712_v3  ;;  %v2922_v30 = vld [vmem:[%s4766_s11 + $0xe8] sm:$0xff]  ;;  %v3745_v1 = vpack.c.bf16 %v2924_v62, %v2923_v47  ;;  %v2693_v2 = vld [vmem:[%s4768_s13] sm:$0xff] }
 0x5b6   :  { %3702 = vmatprep.subr.bf16.mxu0 %v4019_v38  ;;  %3714 = vmatprep.subr.bf16.mxu1 %v4019_v38  ;;  %v3742_v39 = vpack.c.bf16 %v2922_v30, %v2921_v23  ;;  %v2694_v3 = vld [vmem:[%s4768_s13 + $0x8] sm:$0xff]  ;;  %v2697_v9 = vld [vmem:[%s4768_s13 + $0x20] sm:$0xff] }
 0x5b7   :  { %3289 = vmatprep.mubr.f32.mxu0 %v2142_v11  ;;  %3327 = vmatprep.mubr.f32.mxu1 %v2142_v11  ;;  %v3748_v50 = vpack.c.bf16 %v2694_v3, %v2693_v2  ;;  %v2698_v11 = vld [vmem:[%s4768_s13 + $0x28] sm:$0xff] }
 0x5b8   :  { %3290 = vmatmul.mubr.f32.gmra.mrb[28].mxu0 %v2143_v7  ;;  %3328 = vmatmul.mubr.f32.gmra.mrb[64].mxu1 %v2143_v7  ;;  %v3751_v7 = vpack.c.bf16 %v2696_v6, %v2695_v5 }
 0x5b9   :  { %3704 = vmatpush3.bf16.msra.mxu0 %v3703_v12  ;;  %3716 = vmatpush3.bf16.msra.mxu1 %v3715_v13  ;;  %v3754_v12 = vpack.c.bf16 %v2698_v11, %v2697_v9  ;;  %v2699_v13 = vld [vmem:[%s4768_s13 + $0x30] sm:$0xff] }
 0x5ba   :  { %3705 = vmatprep.subr.bf16.mxu0 %v4019_v38  ;;  %3717 = vmatprep.subr.bf16.mxu1 %v4019_v38  ;;  %v3757_v15 = vpack.c.bf16 %v2700_v14, %v2699_v13 }
 0x5bb   :  { %3346 = vmatprep.mubr.msk.f32.mxu0 %vm4020_vm6, %v4017_v0  ;;  %3365 = vmatprep.mubr.msk.f32.mxu1 %vm4020_vm6, %v4017_v0 }
 0x5bd   :  { %3707 = vmatpush3.bf16.msra.mxu0 %v3706_v19  ;;  %3719 = vmatpush3.bf16.msra.mxu1 %v3718_v20  ;;  %v3760_v19 = vpack.c.bf16 %v2702_v18, %v2701_v17  ;;  %v2703_v20 = vld [vmem:[%s4768_s13 + $0x50] sm:$0xff] }
 0x5be   :  { %3708 = vmatprep.subr.bf16.mxu0 %v4019_v38  ;;  %3720 = vmatprep.subr.bf16.mxu1 %v4019_v38  ;;  %v3763_v22 = vpack.c.bf16 %v2704_v21, %v2703_v20 }
 0x5c1   :  { %3710 = vmatpush3.bf16.msra.mxu0 %v3709_v24  ;;  %3722 = vmatpush3.bf16.msra.mxu1 %v3721_v27  ;;  %v2705_v24 = vld [vmem:[%s4768_s13 + $0x60] sm:$0xff]  ;;  %v2707_v27 = vld [vmem:[%s4768_s13 + $0x70] sm:$0xff] }
 0x5c2   :  { %3723 = vmatprep.subr.bf16.mxu0 %v4019_v38  ;;  %3735 = vmatprep.subr.bf16.mxu1 %v4019_v38  ;;  %v3766_v26 = vpack.c.bf16 %v2706_v25, %v2705_v24 }
 0x687   :  { %v3288_v31 = vpop.f32.mrb[26].mxu0  ;;  %v3326_v33 = vpop.f32.mrb[62].mxu1 }
 0x688   :  { %v2347_v40 = vmax.f32 %v3288_v31, %v3326_v33  ;;  %v2242_v42 = vpop.f32.mrb[27].mxu0  ;;  %v2327_v45 = vpop.f32.mrb[63].mxu1 }
 0x689   :  { %v2346_v46 = vmax.f32 %v2242_v42, %v2327_v45  ;;  %v2926_v45 = vld [vmem:[%s4767_s12] ss:$0 sm:$0xff] }
 0x68a   :  { %v2351_v51 = vmax.f32 %v2347_v40, 0.0 }
 0x68b   :  { %v2350_v56 = vmax.f32 %v2346_v46, 0.0  ;;  %v3291_v57 = vpop.f32.mrb[28].mxu0  ;;  %v3329_v58 = vpop.f32.mrb[64].mxu1 }
 0x68c   :  { %v2349_v60 = vmax.f32 %v3291_v57, %v3329_v58  ;;  %v2252_v61 = vpop.f32.mrb[29].mxu0  ;;  %v2337_v32 = vpop.f32.mrb[65].mxu1  ;;  %3347 = vmatmul.mubr.msk.f32.vlgmr.msra.gmra.mrb[30].mxu0 %vm2371_vm9, %v2351_v51 }
 0x68d   :  { %v2348_v36 = vmax.f32 %v2252_v61, %v2337_v32  ;;  %3725 = vmatpush3.bf16.msra.mxu0 %v3724_v49  ;;  %3366 = vmatmul.mubr.msk.f32.vlgmr.msra.gmra.mrb[66].mxu1 %vm2371_vm9, %v2350_v56 }
 0x68e   :  { %3737 = vmatpush3.bf16.msra.mxu1 %v3736_v52  ;;  %3726 = vmatprep.subr.bf16.mxu0 %v4019_v38  ;;  %v2353_v53 = vmax.f32 %v2349_v60, 0.0  ;;  %v2927_v52 = vld [vmem:[%s4769_s14] ss:$0 sm:$0xff] }
 0x68f   :  { %3738 = vmatprep.subr.bf16.mxu1 %v4019_v38  ;;  %3384 = vmatprep.mubr.msk.f32.mxu0 %vm4020_vm6, %v4017_v0  ;;  %v2352_v4 = vmax.f32 %v2348_v36, 0.0 }
 0x690   :  { %3403 = vmatprep.mubr.msk.f32.mxu1 %vm4020_vm6, %v4017_v0 }
 0x691   :  { %3728 = vmatpush3.bf16.msra.mxu0 %v3727_v41 }
 0x692   :  { %3740 = vmatpush3.bf16.msra.mxu1 %v3739_v44  ;;  %3729 = vmatprep.subr.bf16.mxu0 %v4019_v38 }
 0x693   :  { %3741 = vmatprep.subr.bf16.mxu1 %v4019_v38 }
 0x695   :  { %3731 = vmatpush3.bf16.msra.mxu0 %v3730_v34 }
 0x696   :  { %3743 = vmatpush3.bf16.msra.mxu1 %v3742_v39  ;;  %3732 = vmatprep.subr.bf16.mxu0 %v4019_v38 }
 0x697   :  { %3744 = vmatprep.subr.bf16.mxu1 %v4019_v38 }
 0x699   :  { %3734 = vmatpush3.bf16.msra.mxu0 %v3733_v63 }
 0x69a   :  { %3746 = vmatpush3.bf16.msra.mxu1 %v3745_v1  ;;  %3747 = vmatprep.subr.bf16.mxu0 %v4019_v38 }
 0x69c   :  { %3385 = vmatmul.mubr.msk.f32.vlgmr.msra.gmra.mrb[32].mxu0 %vm2371_vm9, %v2352_v4 }
 0x69d   :  { %3404 = vmatmul.mubr.msk.f32.vlgmr.msra.gmra.mrb[68].mxu1 %vm2371_vm9, %v2353_v53  ;;  %3749 = vmatpush3.bf16.msra.mxu0 %v3748_v50 }
 0x69e   :  { %3750 = vmatprep.subr.bf16.mxu0 %v4019_v38  ;;  %3436 = vmatprep.mubr.msk.f32.mxu0 %vm4020_vm6, %v4017_v0 }
 0x6a1   :  { %3752 = vmatpush3.bf16.msra.mxu0 %v3751_v7 }
 0x6a2   :  { %3753 = vmatprep.subr.bf16.mxu0 %v4019_v38 }
 0x6a5   :  { %3755 = vmatpush3.bf16.msra.mxu0 %v3754_v12 }
 0x6a6   :  { %3756 = vmatprep.subr.bf16.mxu0 %v4019_v38 }
 0x6a9   :  { %3758 = vmatpush3.bf16.msra.mxu0 %v3757_v15 }
 0x6aa   :  { %3759 = vmatprep.subr.bf16.mxu0 %v4019_v38 }
 0x6ad   :  { %3761 = vmatpush3.bf16.msra.mxu0 %v3760_v19 }
 0x6ae   :  { %3762 = vmatprep.subr.bf16.mxu0 %v4019_v38 }
 0x6b1   :  { %3764 = vmatpush3.bf16.msra.mxu0 %v3763_v22 }
 0x6b2   :  { %3765 = vmatprep.subr.bf16.mxu0 %v4019_v38 }
 0x6b5   :  { %3767 = vmatpush3.bf16.msra.mxu0 %v3766_v26 }
 0x6b6   :  { %3434 = vmatprep.subr.mxu0 %v4017_v0 }
 0x6b9   :  { %3435 = vmatpush3.msra.mxu0 %v2707_v27 }
 0x75f   :  { %v2441_v28 = vpop.f32.mrb[30].mxu0 }
 0x760   :  { %v3348_v29 = vpop.f32.mrb[31].mxu0  ;;  %v2514_v38 = vpop.f32.mrb[66].mxu1 }
 0x761   :  { %v2515_v31 = vadd.f32 %v2514_v38, %v2441_v28  ;;  %v3367_v33 = vpop.f32.mrb[67].mxu1 }
 0x76f   :  { %v2596_v35 = vpop.f32.mrb[32].mxu0 }
 0x770   :  { %v2600_v37 = vadd.f32 %v2596_v35, %v2515_v31  ;;  %v3386_v40 = vpop.f32.mrb[33].mxu0  ;;  %v2679_v42 = vpop.f32.mrb[68].mxu1 }
 0x771   :  { %v3405_v46 = vpop.f32.mrb[69].mxu1 }
 0x772   :  { %v2683_v0 = vadd.f32 %v2679_v42, %v2600_v37 }
 0x774   :  { %v2691_v49 = vadd.f32 %v2926_v45, %v2683_v0 }
 0x776   :  { %v2692_v51 = vmax.f32 %v2691_v49, 0.0 }
 0x778   :  { %3437 = vmatmul.mubr.msk.f32.vlgmr.msra.gmra.mrb[34].mxu0 %vm2715_vm10, %v2692_v51 }
 0x84b   :  { %v2785_v54 = vpop.f32.mrb[34].mxu0 }
 0x84c   :  { %v2786_v55 = vadd.f32 %v2927_v52, %v2785_v54  ;;  %v3438_v56 = vpop.f32.mrb[35].mxu0 }
 0x84e   :  { %2790 = vst.msk [vmem:[#allocation14] sm:$0x3] %vm2789_vm11, %v2786_v55 }
 0x84f   :  { %3986 = shalt.err (!%p3983_p10)
}
 0x850   :  { %s4775_s24 = sld [smem:[#allocation20_spill]] }
 0x856   :  { %s3987_s25 = scalar_lea.hbm %s4775_s24, 32 }
 0x857   :  { %p3988_p11 = scmp.ne.s32.totalorder %s4775_s24, %s3987_s25  ;;  %p3991_p12 = scmp.lt.u32.totalorder %s3987_s25, %s4775_s24 }
 0x859   :  { %p3993_p13 = pnand %p3991_p12, %p3988_p11 }
 0x85b   :  { %3996 = shalt.err (!%p3993_p13)
}
 0x85c   :  { %2800 = dma.vmem_to_hbm [thread:$0]  %s2798_s0, 32, %s4775_s24, [#allocation5]  }
 0x85d   :  { %4005 = dma.done.wait [#allocation5], 32  }
 0x85e   :  { %4006 = vsyncadd [#allocation5], 4294967264 }
 0x85f   :  { %2804 = vsyncpa [#allocation4], 1 }
 0x860   :  { %2805 = vsyncpa [#allocation7], 1 }
 0x861   :  { %2806 = vsyncpa [#allocation10], 1 }
 0x862   :  { %2807 = vsyncpa [#allocation13], 1 }
 0x863   :  { %2808 = vsyncpa [#allocation5], 1 }

</bundles_post_ra>
